<compile_context>
chip_gen: v7x
topology: tpu7x:2x2x1
jax: 0.10.0
libtpu: 0.0.40
codegen_flags: <defaults>
</compile_context>

<pallas_src>
import jax
import jax.numpy as jnp
from jax import lax
from jax.experimental import pallas as pl
from jax.experimental.pallas import tpu as pltpu


X_MAX = 2.0
X_MIN = 0.0
ELEMENT_NUMBER = 250
NET_SIZE = (2, 50, ELEMENT_NUMBER, 1)


def _round_up(v, m):
    return -(-int(v) // int(m)) * int(m)


def _make_net_kernel(return_hidden_layer, rows_per_chunk, n_chunks):
    def kernel(ab_ref, x_ref, w1_ref, b1_ref, w2_ref, b2_ref, w3_ref,
               y_ref, *hidden_out):
        f32 = jnp.float32
        hp = lax.Precision.HIGHEST

        a_row = ab_ref[0:1, :]            # (1, din)
        b_row = ab_ref[1:2, :]            # (1, din)
        w1 = w1_ref[...]                  # (din, H1)
        b1 = b1_ref[...]                  # (1, H1)
        w2 = w2_ref[...]                  # (H1, H2P)   (H2P = 256-padded)
        b2 = b2_ref[...]                  # (1, H2P)
        w3 = w3_ref[...]                  # (1, H2P)
        din = w1.shape[0]

        def chunk(c, carry):
            # 128-row compute chunk inside the (large) DMA tile: keeps the
            # (R, 256) f32 intermediates within the vreg file (no spill storms)
            # while the pipeline tile stays big.
            r = pl.multiple_of(c * rows_per_chunk, rows_per_chunk)
            x = x_ref[pl.ds(r, rows_per_chunk), :].astype(f32)   # (R, din)

            # ---- NormalizeLayer: a * x + b --------------------------------
            h = x * a_row + b_row                                # (R, din)

            # ---- Linear(2 -> 50): 2 broadcast FMAs on the VPU (a K=2 MXU
            # matmul would be ~98% padding). ---------------------------------
            h1 = b1
            for d in range(din):                                 # unrolled at trace time
                h1 = h1 + h[:, d:d + 1] * w1[d:d + 1, :]
            h1 = jnp.tanh(h1)                                    # (R, H1), native EUP tanh

            # ---- Linear(50 -> 250[256]) on the MXU.  HIGHEST precision: the
            # extra f32 passes hide under the EUP(tanh) slack. ---------------
            h2 = jnp.tanh(
                jnp.dot(h1, w2, preferred_element_type=f32, precision=hp) + b2
            )                                                    # (R, H2P)

            # ---- Head Linear(250 -> 1, no bias) as (1,H2P) x (R,H2P)^T ->
            # (1, R): result is naturally lane-dense, no masked stores. ------
            y_t = jnp.einsum('od,rd->or', w3, h2,
                             preferred_element_type=f32, precision=hp)
            y_ref[pl.ds(c, 1), :] = y_t.astype(y_ref.dtype)      # (1, R)

            if return_hidden_layer:
                hidden_out[0][pl.ds(r, rows_per_chunk), :] = h2.astype(
                    hidden_out[0].dtype)
            return carry

        lax.fori_loop(0, n_chunks, chunk, None, unroll=True)

    return kernel


def net_forward(x, a, b, w1, b1, w2, b2, w3, *,
                block_rows=1024, return_hidden_layer=False):
    """Pallas TPU forward pass of `Net`.

    x : (N, 2) collocation points.
    a, b : (2,) NormalizeLayer parameters.
    w1 (50,2), b1 (50,), w2 (250,50), b2 (250,), w3 (1,250): Linear params in
    PyTorch (out_features, in_features) layout.

    Returns (N, 1), or the last tanh activation (N, 250) when
    return_hidden_layer=True (== Net.get_hidden_layer_output).
    """
    n, din = x.shape
    h1_dim, h2_dim = w1.shape[0], w2.shape[0]
    assert w1.shape == (h1_dim, din)
    assert w2.shape == (h2_dim, h1_dim)
    assert w3.shape == (1, h2_dim)

    f32 = jnp.float32
    ab = jnp.stack([jnp.asarray(a, f32), jnp.asarray(b, f32)], axis=0)  # (2, din)

    # Pad the 250-wide hidden dim to a multiple of 128 (-> 256) so all stores
    # and the MXU output are lane-dense.  Padded columns are exact zeros
    # (zero weights + zero bias => tanh(0) = 0), sliced off in the wrapper.
    h2p = _round_up(h2_dim, 128)
    pc = h2p - h2_dim
    w1t = w1.astype(f32).T                                      # (din, H1)
    b1r = b1.astype(f32).reshape(1, h1_dim)                     # (1, H1)
    w2t = jnp.pad(w2.astype(f32).T, ((0, 0), (0, pc)))          # (H1, H2P)
    b2r = jnp.pad(b2.astype(f32), (0, pc)).reshape(1, h2p)      # (1, H2P)
    w3r = jnp.pad(w3.astype(f32), ((0, 0), (0, pc)))            # (1, H2P)

    # ---- batch tiling ------------------------------------------------------
    # Big, 128-aligned DMA tiles to amortize the ~0.35us per-grid-step cost.
    tb = max(128, min(_round_up(block_rows, 128), _round_up(n, 128)))
    # Guarantee >= 2 grid steps (when N allows) so v7x's two TensorCores both
    # get work; harmless on v5e/v6e.
    if n > 128 and pl.cdiv(n, tb) < 2:
        tb = max(128, _round_up(pl.cdiv(n, 2), 128))
    rpc = 128                        # rows per in-kernel compute chunk
    n_chunks = tb // rpc             # tb is a multiple of 128
    num_tiles = pl.cdiv(n, tb)

    out_dtype = x.dtype
    # y output laid out (num_tiles, n_chunks, 128): fully lane-dense stores;
    # the wrapper reshape back to (N, 1) is free.
    out_shapes = [jax.ShapeDtypeStruct((num_tiles, n_chunks, rpc), out_dtype)]
    out_specs = [pl.BlockSpec((None, n_chunks, rpc), lambda i: (i, 0, 0))]
    if return_hidden_layer:
        out_shapes.append(jax.ShapeDtypeStruct((n, h2p), out_dtype))
        out_specs.append(pl.BlockSpec((tb, h2p), lambda i: (i, 0)))

    result = pl.pallas_call(
        _make_net_kernel(return_hidden_layer, rpc, n_chunks),
        out_shape=tuple(out_shapes),
        grid_spec=pltpu.PrefetchScalarGridSpec(
            num_scalar_prefetch=0,
            grid=(num_tiles,),
            in_specs=[
                pl.BlockSpec((2, din), lambda i: (0, 0)),           # [a; b]
                pl.BlockSpec((tb, din), lambda i: (i, 0)),          # x batch tile
                pl.BlockSpec((din, h1_dim), lambda i: (0, 0)),      # W1^T (resident)
                pl.BlockSpec((1, h1_dim), lambda i: (0, 0)),        # b1
                pl.BlockSpec((h1_dim, h2p), lambda i: (0, 0)),      # W2^T padded (resident)
                pl.BlockSpec((1, h2p), lambda i: (0, 0)),           # b2 padded
                pl.BlockSpec((1, h2p), lambda i: (0, 0)),           # W3 row padded (resident)
            ],
            out_specs=tuple(out_specs),
        ),
        compiler_params=pltpu.CompilerParams(
            dimension_semantics=("parallel",),       # rows independent -> dual-TC on v7x
            vmem_limit_bytes=32 * 1024 * 1024,       # generous; actual use is a few MiB
        ),
    )(ab, x, w1t, b1r, w2t, b2r, w3r)

    if not isinstance(result, (tuple, list)):
        result = (result,)
    if return_hidden_layer:
        return result[1][:, :h2_dim]
    return result[0].reshape(-1)[:n].reshape(n, 1)


if __name__ == "__main__":
    key = jax.random.PRNGKey(0)
    k_x, k_x2, k_w1, k_b1, k_w2, k_b2, k_w3 = jax.random.split(key, 7)

    size = NET_SIZE
    f32 = jnp.float32

    # NormalizeLayer parameters (module defaults).
    a = jnp.full((size[0],), 2.0 / (X_MAX - X_MIN), dtype=f32)
    b = jnp.full((size[0],), -1.0 - 2.0 * X_MIN / (X_MAX - X_MIN), dtype=f32)

    def lin_init(kw, kb, fan_out, fan_in, with_bias=True):
        bound = 1.0 / (fan_in ** 0.5)   # torch.nn.Linear default init range
        w = jax.random.uniform(kw, (fan_out, fan_in), f32, -bound, bound)
        bias = (jax.random.uniform(kb, (fan_out,), f32, -bound, bound)
                if with_bias else None)
        return w, bias

    w1, b1 = lin_init(k_w1, k_b1, size[1], size[0])
    w2, b2 = lin_init(k_w2, k_b2, size[2], size[1])
    w3, _ = lin_init(k_w3, k_w3, size[3], size[2], with_bias=False)

    hp = lax.Precision.HIGHEST

    def reference(xv):
        hn = xv * a + b
        h1r = jnp.tanh(jnp.dot(hn, w1.T, precision=hp) + b1)
        h2r = jnp.tanh(jnp.dot(h1r, w2.T, precision=hp) + b2)
        return jnp.dot(h2r, w3.T, precision=hp), h2r

    # --- test 1: N=256 (two 128-row grid tiles), y + hidden ------------------
    x = jax.random.uniform(k_x, (256, size[0]), f32, X_MIN, X_MAX)
    y = jax.block_until_ready(net_forward(x, a, b, w1, b1, w2, b2, w3))
    hidden = jax.block_until_ready(
        net_forward(x, a, b, w1, b1, w2, b2, w3, return_hidden_layer=True))
    y_ref, h2_ref = reference(x)
    assert y.shape == (x.shape[0], 1)
    assert hidden.shape == (x.shape[0], size[2])
    assert jnp.allclose(y, y_ref, atol=1e-4, rtol=1e-4), \
        float(jnp.max(jnp.abs(y - y_ref)))
    assert jnp.allclose(hidden, h2_ref, atol=1e-4, rtol=1e-4), \
        float(jnp.max(jnp.abs(hidden - h2_ref)))

    # --- test 2: N=600 (partial last tile, multi-chunk inner loop), y only ---
    x2 = jax.random.uniform(k_x2, (600, size[0]), f32, X_MIN, X_MAX)
    y2 = jax.block_until_ready(net_forward(x2, a, b, w1, b1, w2, b2, w3))
    y2_ref, _ = reference(x2)
    assert y2.shape == (x2.shape[0], 1)
    assert jnp.allclose(y2, y2_ref, atol=1e-4, rtol=1e-4), \
        float(jnp.max(jnp.abs(y2 - y2_ref)))

    print("KERNEL_OK")
</pallas_src>

<mosaic_0001>
module attributes {stable_mosaic.version = 11 : i64} {
  func.func @kernel(%arg0: i32, %arg1: memref<2x2xf32, #tpu.memory_space<vmem>>, %arg2: memref<128x2xf32, #tpu.memory_space<vmem>>, %arg3: memref<2x50xf32, #tpu.memory_space<vmem>>, %arg4: memref<1x50xf32, #tpu.memory_space<vmem>>, %arg5: memref<50x256xf32, #tpu.memory_space<vmem>>, %arg6: memref<1x256xf32, #tpu.memory_space<vmem>>, %arg7: memref<1x256xf32, #tpu.memory_space<vmem>>, %arg8: memref<1x1x128xf32, #tpu.memory_space<vmem>>) attributes {dimension_semantics = [#tpu.dimension_semantics<parallel>], iteration_bounds = array<i64: 2>, scalar_prefetch = 0 : i64, scratch_operands = 0 : i64, tpu.core_type = #tpu.core_type<tc>, window_params = [{pipeline_mode = #tpu.pipeline_mode<synchronous>, transform_indices = @transform_0, window_bounds = array<i64: 2, 2>}, {transform_indices = @transform_1, window_bounds = array<i64: 128, 2>}, {pipeline_mode = #tpu.pipeline_mode<synchronous>, transform_indices = @transform_2, window_bounds = array<i64: 2, 50>}, {pipeline_mode = #tpu.pipeline_mode<synchronous>, transform_indices = @transform_3, window_bounds = array<i64: 1, 50>}, {pipeline_mode = #tpu.pipeline_mode<synchronous>, transform_indices = @transform_4, window_bounds = array<i64: 50, 256>}, {pipeline_mode = #tpu.pipeline_mode<synchronous>, transform_indices = @transform_5, window_bounds = array<i64: 1, 256>}, {pipeline_mode = #tpu.pipeline_mode<synchronous>, transform_indices = @transform_6, window_bounds = array<i64: 1, 256>}, {transform_indices = @transform_7, window_bounds = array<i64: 1, 1, 128>}]} {
    %c0 = arith.constant 0 : index
    %c0_0 = arith.constant 0 : index
    %0 = vector.load %arg1[%c0, %c0_0] : memref<2x2xf32, #tpu.memory_space<vmem>>, vector<1x2xf32>
    %c1 = arith.constant 1 : index
    %c0_1 = arith.constant 0 : index
    %1 = vector.load %arg1[%c1, %c0_1] : memref<2x2xf32, #tpu.memory_space<vmem>>, vector<1x2xf32>
    %c0_2 = arith.constant 0 : index
    %c0_3 = arith.constant 0 : index
    %2 = vector.load %arg3[%c0_2, %c0_3] : memref<2x50xf32, #tpu.memory_space<vmem>>, vector<2x50xf32>
    %c0_4 = arith.constant 0 : index
    %c0_5 = arith.constant 0 : index
    %3 = vector.load %arg4[%c0_4, %c0_5] : memref<1x50xf32, #tpu.memory_space<vmem>>, vector<1x50xf32>
    %c0_6 = arith.constant 0 : index
    %c0_7 = arith.constant 0 : index
    %4 = vector.load %arg5[%c0_6, %c0_7] : memref<50x256xf32, #tpu.memory_space<vmem>>, vector<50x256xf32>
    %c0_8 = arith.constant 0 : index
    %c0_9 = arith.constant 0 : index
    %5 = vector.load %arg6[%c0_8, %c0_9] : memref<1x256xf32, #tpu.memory_space<vmem>>, vector<1x256xf32>
    %c0_10 = arith.constant 0 : index
    %c0_11 = arith.constant 0 : index
    %6 = vector.load %arg7[%c0_10, %c0_11] : memref<1x256xf32, #tpu.memory_space<vmem>>, vector<1x256xf32>
    %c0_i32 = arith.constant 0 : i32
    %c128_i32 = arith.constant 128 : i32
    %7 = arith.muli %c0_i32, %c128_i32 : i32
    %8 = tpu.assume_multiple %7, 128 : i32
    %9 = arith.index_cast %8 : i32 to index
    %c0_12 = arith.constant 0 : index
    %10 = vector.load %arg2[%9, %c0_12] : memref<128x2xf32, #tpu.memory_space<vmem>>, vector<128x2xf32>
    %11 = vector.broadcast %0 : vector<1x2xf32> to vector<128x2xf32>
    %12 = arith.mulf %10, %11 : vector<128x2xf32>
    %13 = vector.broadcast %1 : vector<1x2xf32> to vector<128x2xf32>
    %14 = arith.addf %12, %13 : vector<128x2xf32>
    %15 = vector.extract_strided_slice %14 {offsets = [0, 0], sizes = [128, 1], strides = [1, 1]} : vector<128x2xf32> to vector<128x1xf32>
    %16 = vector.extract_strided_slice %2 {offsets = [0, 0], sizes = [1, 50], strides = [1, 1]} : vector<2x50xf32> to vector<1x50xf32>
    %17 = vector.broadcast %15 : vector<128x1xf32> to vector<128x50xf32>
    %18 = vector.broadcast %16 : vector<1x50xf32> to vector<128x50xf32>
    %19 = arith.mulf %17, %18 : vector<128x50xf32>
    %20 = vector.broadcast %3 : vector<1x50xf32> to vector<128x50xf32>
    %21 = arith.addf %20, %19 : vector<128x50xf32>
    %22 = vector.extract_strided_slice %14 {offsets = [0, 1], sizes = [128, 1], strides = [1, 1]} : vector<128x2xf32> to vector<128x1xf32>
    %23 = vector.extract_strided_slice %2 {offsets = [1, 0], sizes = [1, 50], strides = [1, 1]} : vector<2x50xf32> to vector<1x50xf32>
    %24 = vector.broadcast %22 : vector<128x1xf32> to vector<128x50xf32>
    %25 = vector.broadcast %23 : vector<1x50xf32> to vector<128x50xf32>
    %26 = arith.mulf %24, %25 : vector<128x50xf32>
    %27 = arith.addf %21, %26 : vector<128x50xf32>
    %28 = math.tanh %27 : vector<128x50xf32>
    %cst = arith.constant dense<0.000000e+00> : vector<128x256xf32>
    %29 = tpu.matmul %28, %4, %cst {dimension_numbers = #tpu.dot_dimension_numbers<[1], [0], [0], [1], [0, 0, 1, 1], [], []>, precision = #tpu.contract_precision<fp32>} : vector<128x50xf32>, vector<50x256xf32>, vector<128x256xf32> -> vector<128x256xf32>
    %30 = vector.broadcast %5 : vector<1x256xf32> to vector<128x256xf32>
    %31 = arith.addf %29, %30 : vector<128x256xf32>
    %32 = math.tanh %31 : vector<128x256xf32>
    "tpu.trace_start"() <{level = 10 : i32, message = "od,rd->or"}> : () -> ()
    %cst_13 = arith.constant dense<0.000000e+00> : vector<1x128xf32>
    %33 = tpu.matmul %6, %32, %cst_13 {dimension_numbers = #tpu.dot_dimension_numbers<[1], [1], [0], [0], [0, 0, 1, 0], [], []>, precision = #tpu.contract_precision<fp32>} : vector<1x256xf32>, vector<128x256xf32>, vector<1x128xf32> -> vector<1x128xf32>
    "tpu.trace_stop"() : () -> ()
    %c0_14 = arith.constant 0 : index
    %34 = arith.index_cast %c0_i32 : i32 to index
    %c0_15 = arith.constant 0 : index
    %35 = vector.load %arg8[%c0_14, %34, %c0_15] : memref<1x1x128xf32, #tpu.memory_space<vmem>>, vector<1x1x128xf32>
    %36 = vector.shape_cast %35 : vector<1x1x128xf32> to vector<1x128xf32>
    %37 = vector.shape_cast %33 : vector<1x128xf32> to vector<1x1x128xf32>
    tpu.vector_store %arg8[%c0_14, %34, %c0_15], %37 {strides = array<i32>} : memref<1x1x128xf32, #tpu.memory_space<vmem>>, vector<1x1x128xf32>,
    %c1_i32 = arith.constant 1 : i32
    return
  }
  func.func @transform_0(%arg0: i32) -> (i32, i32) {
    %c0_i32 = arith.constant 0 : i32
    %c0_i32_0 = arith.constant 0 : i32
    %c0_i32_1 = arith.constant 0 : i32
    return %c0_i32, %c0_i32_0 : i32, i32
  }
  func.func @transform_1(%arg0: i32) -> (i32, i32) {
    %c0_i32 = arith.constant 0 : i32
    %c0_i32_0 = arith.constant 0 : i32
    return %arg0, %c0_i32 : i32, i32
  }
  func.func @transform_2(%arg0: i32) -> (i32, i32) {
    %c0_i32 = arith.constant 0 : i32
    %c0_i32_0 = arith.constant 0 : i32
    %c0_i32_1 = arith.constant 0 : i32
    return %c0_i32, %c0_i32_0 : i32, i32
  }
  func.func @transform_3(%arg0: i32) -> (i32, i32) {
    %c0_i32 = arith.constant 0 : i32
    %c0_i32_0 = arith.constant 0 : i32
    %c0_i32_1 = arith.constant 0 : i32
    return %c0_i32, %c0_i32_0 : i32, i32
  }
  func.func @transform_4(%arg0: i32) -> (i32, i32) {
    %c0_i32 = arith.constant 0 : i32
    %c0_i32_0 = arith.constant 0 : i32
    %c0_i32_1 = arith.constant 0 : i32
    return %c0_i32, %c0_i32_0 : i32, i32
  }
  func.func @transform_5(%arg0: i32) -> (i32, i32) {
    %c0_i32 = arith.constant 0 : i32
    %c0_i32_0 = arith.constant 0 : i32
    %c0_i32_1 = arith.constant 0 : i32
    return %c0_i32, %c0_i32_0 : i32, i32
  }
  func.func @transform_6(%arg0: i32) -> (i32, i32) {
    %c0_i32 = arith.constant 0 : i32
    %c0_i32_0 = arith.constant 0 : i32
    %c0_i32_1 = arith.constant 0 : i32
    return %c0_i32, %c0_i32_0 : i32, i32
  }
  func.func @transform_7(%arg0: i32) -> (i32, i32, i32) {
    %c0_i32 = arith.constant 0 : i32
    %c0_i32_0 = arith.constant 0 : i32
    %c0_i32_1 = arith.constant 0 : i32
    return %arg0, %c0_i32, %c0_i32_0 : i32, i32, i32
  }
}

</mosaic_0001>

<bundles_post_ra>
// kernel: tpu_custom_call.1
= control target key start
LH: loop header
LB: loop body
LE: loop exit
PB: predicated region body
PF: predicated region fallthrough
CT: control target
= control target key end

     0   :  { %12 = vsyncpa [#allocation3], 0  ;;  %s5110_s0 = inlined_call_operand.vmem [shape: f32[2,2], index: 0, kind: input, shape index: {}]   ;;  %s5111_s1 = inlined_call_operand.vmem [shape: f32[256,2], index: 1, kind: input, shape index: {}]   ;;  %s5112_s2 = inlined_call_operand.vmem [shape: f32[2,50], index: 2, kind: input, shape index: {}]   ;;  %s5113_s3 = inlined_call_operand.vmem [shape: f32[1,50], index: 3, kind: input, shape index: {}]   ;;  %s5114_s4 = inlined_call_operand.vmem [shape: f32[50,256], index: 4, kind: input, shape index: {}]   ;;  %s5115_s5 = inlined_call_operand.vmem [shape: f32[1,256], index: 5, kind: input, shape index: {}]   ;;  %s5116_s6 = inlined_call_operand.vmem [shape: f32[1,256], index: 6, kind: input, shape index: {}]   ;;  %s5117_s7 = inlined_call_operand.hbm [shape: f32[2,1,128], index: 7, kind: output, shape index: {}]  }
   0x1   :  { %14 = vsyncpa [#allocation3 + $0x1], 0  ;;  %s3718_s24 = smov 0   ;;  %s3720_s25 = smov 0  }
   0x2   :  { %s3722_s26 = smov 0   ;;  %s3724_s27 = smov 0  }
   0x3 LB: > { %s2988_s28 = sadd.s32 4294967295, %s3672_s27   ;;  %s2989_s29 = sadd.s32 4294967294, %s3672_s27   ;;  %s3672_s27 = sphi %s3724_s27, %s5369_s27   ;;  %s3668_s26 = sphi %s3722_s26, %s5368_s26   ;;  %s3664_s25 = sphi %s3720_s25, %s5367_s25   ;;  %s3660_s24 = sphi %s3718_s24, %s5366_s24  }
   0x4   : > { %s3741_s30 = sadd.s32 1, %s3672_s27   ;;  %s179_s8 = sadd.s32 1, %s3668_s26 }
   0x5   : > { %s176_s9 = ssub.s32 %s3672_s27, %s3741_s30  ;;  %p189_p0 = scmp.ne.s32.totalorder %s3668_s26, %s3664_s25 }
   0x6   : > { %p177_p1 = scmp.eq.s32.totalorder %s176_s9, 0  ;;  %p190_p2 = scmp.eq.s32.totalorder %s2988_s28, 1 }
   0x7   : > { %p195_p3 = scmp.ne.s32.totalorder %s3664_s25, %s3660_s24  ;;  %p196_p4 = scmp.eq.s32.totalorder %s2989_s29, 1 }
   0x8   : > { %s3751_s10 = scalar_select %p177_p1, %s3668_s26, %s179_s8  }
   0x9   : > { %p3753_p5 = por %p190_p2, %p189_p0  ;;  %p3757_p6 = por %p196_p4, %p195_p3 }
   0xa   : > { %p2992_p7 = scmp.ge.s32.totalorder %s3672_s27, 1  ;;  %p241_p8 = scmp.lt.s32.totalorder %s3672_s27, 3 }
   0xc   : > { %p242_p9 = pnand %p2992_p7, %p241_p8 }
   0xe   : > { %245 = sbr.rel (%p242_p9) target bundleno = 1362 (0x552), region = 48 }
  0x15   : > { %s3763_s13 = sshll.u32 %s2988_s28, 4  ;;  %v3674_v0 = vmov 0   ;;  %v3770_v1 = vld [vmem:[%s5110_s0] ss:$0 sm:$0xff]  ;;  %v3780_v2 = vld [vmem:[%s5110_s0 + $0x1] ss:$0 sm:$0xff] }
  0x16   : > { %3511 = vset.pattern.permute.xlu1 %v3674_v0  ;;  %3509 = vset.pattern.permute.xlu0 %v3674_v0  ;;  %p273_p10 = scmp.lt.s32.totalorder %s3763_s13, 31  ;;  %v3675_v12 = vmov 1   ;;  %v3802_v21 = vld [vmem:[%s5114_s4 + $0x8] sm:$0xff]  ;;  %v3807_v22 = vld [vmem:[%s5114_s4 + $0x18] sm:$0xff]  ;;  %v282_v26 = vld [vmem:[%s5114_s4] sm:$0xff]  ;;  %vm652_vm0 = vcmask 1041408   ;;  %s5070_s28 = scalar_lea.hbm %s5117_s7, %s3763_s13 }
  0x17   : > { %v659_v24 = vand.u32 4294901760, %v3802_v21  ;;  %v663_v25 = vand.u32 4294901760, %v3807_v22  ;;  %v284_v27 = vld [vmem:[%s5114_s4 + $0x10] sm:$0xff]  ;;  %v661_v28 = vand.u32 4294901760, %v282_v26  ;;  %v287_v34 = vld [vmem:[%s5114_s4 + $0x28] sm:$0xff]  ;;  %v289_v35 = vld [vmem:[%s5114_s4 + $0x38] sm:$0xff] }
  0x18   : > { %s274_s14 = scalar_select %p273_p10, %s3763_s13, 31  ;;  %v665_v29 = vand.u32 4294901760, %v284_v27  ;;  %v667_v37 = vand.u32 4294901760, %v287_v34  ;;  %v671_v38 = vand.u32 4294901760, %v289_v35  ;;  %v286_v39 = vld [vmem:[%s5114_s4 + $0x20] sm:$0xff]  ;;  %v288_v40 = vld [vmem:[%s5114_s4 + $0x30] sm:$0xff] }
  0x19   : > { %v3822_v30 = vpack.c.bf16 %v663_v25, %v659_v24  ;;  %v669_v41 = vand.u32 4294901760, %v286_v39  ;;  %v673_v42 = vand.u32 4294901760, %v288_v40  ;;  %v3843_v43 = vsub.f32 %v282_v26, %v661_v28  ;;  %v291_v49 = vld [vmem:[%s5114_s4 + $0x48] sm:$0xff]  ;;  %v293_v50 = vld [vmem:[%s5114_s4 + $0x58] sm:$0xff]  ;;  %v290_v54 = vld [vmem:[%s5114_s4 + $0x40] sm:$0xff]  ;;  %s270_s18 = sand.u32 1, %s3664_s25  }
  0x1a   : > { %s2994_s15 = sshll.u32 %s274_s14, 3  ;;  %v3826_v33 = vpack.c.bf16 %v665_v29, %v661_v28  ;;  %v3845_v44 = vsub.f32 %v284_v27, %v665_v29  ;;  %v3849_v47 = vpack.c.bf16 %v671_v38, %v667_v37  ;;  %v675_v52 = vand.u32 4294901760, %v291_v49  ;;  %v292_v55 = vld [vmem:[%s5114_s4 + $0x50] sm:$0xff]  ;;  %s271_s19 = scalar_lea.vmem [#allocation2], %s270_s18 }
  0x1b   : > { %s3775_s20 = scalar_lea.vmem %s5111_s1, %s2994_s15  ;;  %3002 = vmatprep.subr.bf16.mxu0 %v3822_v30  ;;  %v3851_v48 = vpack.c.bf16 %v673_v42, %v669_v41  ;;  %v679_v53 = vand.u32 4294901760, %v293_v50  ;;  %v677_v56 = vand.u32 4294901760, %v290_v54  ;;  %v681_v57 = vand.u32 4294901760, %v292_v55  ;;  %s2934_s21 = sshll.u32 %s271_s19, 4  ;;  %s5064_s21 = int_to_ptr.vmem [resolvable:$true] %s2934_s21 }
  0x1c   : > { %v299_v3 = vld [vmem:[%s3775_s20 + $0x8] sm:$0xff]  ;;  %v298_v4 = vld [vmem:[%s3775_s20] sm:$0xff]  ;;  %v300_v9 = vld [vmem:[%s3775_s20 + $0x10] sm:$0xff]  ;;  %3004 = vmatpush1.bf16.msra.mxu0 %v3826_v33  ;;  %v3867_v58 = vsub.f32 %v287_v34, %v667_v37  ;;  %v3869_v59 = vsub.f32 %v289_v35, %v671_v38  ;;  %v3872_v60 = vsub.f32 %v286_v39, %v669_v41  ;;  %v3874_v61 = vsub.f32 %v288_v40, %v673_v42  ;;  %s3610_s29 = scalar_lea.vmem %s5064_s21, 16  ;;  %s3677_s8 = smov [#allocation2]  }
  0x1d   : > { %v319_v5 = vmul.f32 %v3770_v1, %v299_v3  ;;  %v318_v6 = vmul.f32 %v3770_v1, %v298_v4  ;;  %v320_v10 = vmul.f32 %v3770_v1, %v300_v9  ;;  %v301_v11 = vld [vmem:[%s3775_s20 + $0x18] sm:$0xff]  ;;  %v302_v15 = vld [vmem:[%s3775_s20 + $0x20] sm:$0xff]  ;;  %v303_v18 = vld [vmem:[%s3775_s20 + $0x28] sm:$0xff]  ;;  %3006 = vmatprep.subr.bf16.mxu0 %v3849_v47  ;;  %v3880_v3 = vpack.c.bf16 %v681_v57, %v677_v56  ;;  %p3611_p11 = scmp.ne.s32.totalorder %s5064_s21, %s3610_s29  ;;  %s3614_s9 = sshll.u32 %s3677_s8, 4  ;;  %s3615_s9 = int_to_ptr.vmem [resolvable:$false] %s3614_s9 }
  0x1e   : > { %v321_v14 = vmul.f32 %v3770_v1, %v301_v11  ;;  %v322_v17 = vmul.f32 %v3770_v1, %v302_v15  ;;  %v323_v20 = vmul.f32 %v3770_v1, %v303_v18  ;;  %v304_v23 = vld [vmem:[%s3775_s20 + $0x30] sm:$0xff]  ;;  %v305_v36 = vld [vmem:[%s3775_s20 + $0x38] sm:$0xff]  ;;  %v306_v51 = vld [vmem:[%s3775_s20 + $0x40] sm:$0xff]  ;;  %v3894_v9 = vsub.f32 %v293_v50, %v679_v53  ;;  %s3616_s14 = scalar_lea.vmem %s3615_s9, 32  ;;  %p3617_p0 = scmp.lt.s32.totalorder %s5064_s21, %s3615_s9 }
  0x1f   : > { %v339_v7 = vadd.f32 %v3780_v2, %v319_v5  ;;  %v338_v8 = vadd.f32 %v3780_v2, %v318_v6  ;;  %v340_v13 = vadd.f32 %v3780_v2, %v320_v10  ;;  %v324_v32 = vmul.f32 %v3770_v1, %v304_v23  ;;  %v307_v4 = vld [vmem:[%s3775_s20 + $0x48] sm:$0xff]  ;;  %v309_v27 = vld [vmem:[%s3775_s20 + $0x58] sm:$0xff]  ;;  %p3612_p12 = pnand %p3611_p11, %p3753_p5  ;;  %p3618_p1 = scmp.lt.s32.totalorder %s3616_s14, %s3610_s29 }
  0x20   : > { %v341_v16 = vadd.f32 %v3780_v2, %v321_v14  ;;  %v342_v19 = vadd.f32 %v3780_v2, %v322_v17  ;;  %v343_v31 = vadd.f32 %v3780_v2, %v323_v20  ;;  %v325_v46 = vmul.f32 %v3770_v1, %v305_v36  ;;  %3008 = vmatpush1.bf16.msra.mxu0 %v3851_v48  ;;  %v295_v5 = vld [vmem:[%s5114_s4 + $0x68] sm:$0x3] }
  0x21   : > { %361 = vperm.xlu1 %3511, %v339_v7   ;;  %356 = vperm.xlu0 %3509, %v338_v8   ;;  %v344_v45 = vadd.f32 %v3780_v2, %v324_v32  ;;  %v326_v63 = vmul.f32 %v3770_v1, %v306_v51  ;;  %v3887_v6 = vsel %vm652_vm0, %v295_v5, 0  ;;  %v3897_v10 = vsub.f32 %v290_v54, %v677_v56  ;;  %p3613_p13 = pneg %p3612_p12  ;;  %p3619_p2 = por %p3618_p1, %p3617_p0 }
  0x22   : > { %v345_v62 = vadd.f32 %v3780_v2, %v325_v46  ;;  %v3899_v11 = vsub.f32 %v292_v55, %v681_v57  ;;  %v3904_v14 = vand.u32 4294901760, %v3887_v6  ;;  %v5143_v18 = vmov 0.0   ;;  %v313_v55 = vld [vmem:[%s3775_s20 + $0x78] sm:$0xff] }
  0x23   : > { %737 = vmatprep.mubr.f32.mxu0 %v5143_v18  ;;  %v3922_v20 = vsub.f32 %v3807_v22, %v663_v25  ;;  %v5127_v29 = vand.u32 4294901760, %v3845_v44  ;;  %v329_v25 = vmul.f32 %v3770_v1, %v309_v27  ;;  %v5126_v56 = vand.u32 4294901760, %v3867_v58  ;;  %p3620_p3 = pnand %p3619_p2, %p3613_p13 }
  0x24   : > { %v5124_v57 = vand.u32 4294901760, %v3869_v59  ;;  %v333_v5 = vmul.f32 %v3770_v1, %v313_v55  ;;  %v434_v55 = vlaneseq  ;;  %vm603_vm1 = vcmask 408576  }
  0x25   : > { %3512 = vset.pattern.permute.xlu1 %v3675_v12  ;;  %3510 = vset.pattern.permute.xlu0 %v3675_v12  ;;  %v346_v12 = vadd.f32 %v3780_v2, %v326_v63  ;;  %v935_v36 = vsub.f32 %v3845_v44, %v5127_v29  ;;  %v349_v41 = vadd.f32 %v3780_v2, %v329_v25  ;;  %v5122_v63 = vand.u32 4294901760, %v3874_v61 }
  0x26   : > { %481 = vperm.xlu1 %3512, %v339_v7   ;;  %477 = vperm.xlu0 %3510, %v338_v8   ;;  %v294_v7 = vld [vmem:[%s5114_s4 + $0x60] sm:$0x3]  ;;  %v3892_v8 = vsub.f32 %v291_v49, %v675_v52 }
  0x27   : > { %v3906_v15 = vsel %vm652_vm0, %v294_v7, 0  ;;  %v936_v40 = vand.u32 4294901760, %v935_v36  ;;  %v941_v7 = vsub.f32 %v3867_v58, %v5126_v56  ;;  %v5118_v36 = vand.u32 4294901760, %v3899_v11 }
  0x28   : > { %v3910_v17 = vand.u32 4294901760, %v3906_v15 }
  0x2a   : > { %3513 = vset.pattern.permute.xlu1 %v3674_v0  ;;  %485 = vperm.xlu0 %3510, %v340_v13   ;;  %v3878_v0 = vpack.c.bf16 %v679_v53, %v675_v52  ;;  %v312_v52 = vld [vmem:[%s3775_s20 + $0x70] sm:$0xff] }
  0x2b   : > { %366 = vperm.xlu1 %3513, %v340_v13   ;;  %v327_v13 = vmul.f32 %v3770_v1, %v307_v4  ;;  %v332_v54 = vmul.f32 %v3770_v1, %v312_v52 }
  0x2c   : > { %3010 = vmatprep.subr.bf16.mxu0 %v3878_v0 }
  0x2d   : > { %3012 = vmatpush1.bf16.msra.mxu0 %v3880_v3  ;;  %v347_v23 = vadd.f32 %v3780_v2, %v327_v13  ;;  %v352_v4 = vadd.f32 %v3780_v2, %v332_v54 }
  0x2e   : > { %489 = vperm.xlu0 %3510, %v341_v16   ;;  %684 = vmatprep.subr.mxu0 %v3904_v14 }
  0x2f   : > { %371 = vperm.xlu1 %3513, %v341_v16   ;;  %v308_v16 = vld [vmem:[%s3775_s20 + $0x50] sm:$0xff] }
  0x30   : > { %v328_v26 = vmul.f32 %v3770_v1, %v308_v16  ;;  %v959_v16 = vsub.f32 %v3874_v61, %v5122_v63 }
  0x31   : > { %686 = vmatpush1.msra.mxu0 %v3910_v17 }
  0x32   : > { %493 = vperm.xlu0 %3510, %v342_v19   ;;  %v348_v22 = vadd.f32 %v3780_v2, %v328_v26  ;;  %v960_v27 = vand.u32 4294901760, %v959_v16 }
  0x33   : > { %376 = vperm.xlu1 %3513, %v342_v19   ;;  %v3917_v19 = vsub.f32 %v3802_v21, %v659_v24  ;;  %v5130_v21 = vand.u32 4294901760, %v3922_v20  ;;  %v5128_v24 = vand.u32 4294901760, %v3843_v43 }
  0x35   : > { %v5134_v28 = vand.u32 4294901760, %v3917_v19  ;;  %v929_v34 = vsub.f32 %v3922_v20, %v5130_v21  ;;  %v923_v35 = vsub.f32 %v3843_v43, %v5128_v24 }
  0x36   : > { %497 = vperm.xlu0 %3510, %v343_v31  }
  0x37   : > { %381 = vperm.xlu1 %3513, %v343_v31   ;;  %v310_v31 = vld [vmem:[%s3775_s20 + $0x60] sm:$0xff]  ;;  %v917_v32 = vsub.f32 %v3917_v19, %v5134_v28  ;;  %v930_v38 = vand.u32 4294901760, %v929_v34  ;;  %v924_v39 = vand.u32 4294901760, %v923_v35  ;;  %v5120_v34 = vand.u32 4294901760, %v3894_v9 }
  0x38   : > { %v330_v42 = vmul.f32 %v3770_v1, %v310_v31  ;;  %v5119_v35 = vand.u32 4294901760, %v3897_v10 }
  0x39   : > { %v918_v37 = vand.u32 4294901760, %v917_v32  ;;  %v3950_v49 = vpack.c.bf16 %v936_v40, %v924_v39  ;;  %v5121_v32 = vand.u32 4294901760, %v3892_v8  ;;  %v983_v39 = vsub.f32 %v3899_v11, %v5118_v36 }
  0x3a   : > { %501 = vperm.xlu0 %3510, %v344_v45   ;;  %v350_v50 = vadd.f32 %v3780_v2, %v330_v42 }
  0x3b   : > { %386 = vperm.xlu1 %3513, %v344_v45   ;;  %v311_v45 = vld [vmem:[%s3775_s20 + $0x68] sm:$0xff]  ;;  %v3013_v46 = vpack.c.bf16 %v930_v38, %v918_v37  ;;  %v965_v37 = vsub.f32 %v3892_v8, %v5121_v32  ;;  %v971_v38 = vsub.f32 %v3897_v10, %v5119_v35  ;;  %s2922_s20 = scalar_lea.sflag [#allocation3], %s270_s18 }
  0x3c   : > { %v331_v51 = vmul.f32 %v3770_v1, %v311_v45  ;;  %v984_v45 = vand.u32 4294901760, %v983_v39 }
  0x3d   : > { %3014 = vmatprep.subr.bf16.mxu0 %v3013_v46  ;;  %v966_v40 = vand.u32 4294901760, %v965_v37  ;;  %v972_v42 = vand.u32 4294901760, %v971_v38 }
  0x3e   : > { %505 = vperm.xlu0 %3510, %v345_v62   ;;  %v351_v53 = vadd.f32 %v3780_v2, %v331_v51  ;;  %v3025_v51 = vpack.c.bf16 %v3922_v20, %v3917_v19 }
  0x3f   : > { %391 = vperm.xlu1 %3513, %v345_v62   ;;  %v5123_v62 = vand.u32 4294901760, %v3872_v60 }
  0x41   : > { %v947_v13 = vsub.f32 %v3872_v60, %v5123_v62 }
  0x42   : > { %509 = vperm.xlu0 %3510, %v346_v12  }
  0x43   : > { %396 = vperm.xlu1 %3513, %v346_v12   ;;  %v953_v12 = vsub.f32 %v3869_v59, %v5124_v57  ;;  %v948_v1 = vand.u32 4294901760, %v947_v13 }
  0x45   : > { %v954_v26 = vand.u32 4294901760, %v953_v12  ;;  %v3979_v31 = vpack.c.bf16 %v960_v27, %v948_v1 }
  0x46   : > { %513 = vperm.xlu0 %3510, %v347_v23  }
  0x47   : > { %401 = vperm.xlu1 %3513, %v347_v23   ;;  %v942_v23 = vand.u32 4294901760, %v941_v7  ;;  %v280_v7 = vld [vmem:[%s5112_s2] sm:$0x3] }
  0x49   : > { %v3977_v25 = vpack.c.bf16 %v954_v26, %v942_v23 }
  0x4a   : > { %517 = vperm.xlu0 %3510, %v348_v22  }
  0x4b   : > { %406 = vperm.xlu1 %3513, %v348_v22   ;;  %v353_v22 = vadd.f32 %v3780_v2, %v333_v5  ;;  %v977_v2 = vsub.f32 %v3894_v9, %v5120_v34 }
  0x4e   : > { %521 = vperm.xlu0 %3510, %v349_v41  }
  0x4f   : > { %411 = vperm.xlu1 %3513, %v349_v41   ;;  %v978_v41 = vand.u32 4294901760, %v977_v2  ;;  %v4031_v2 = vld [vmem:[%s5113_s3] ss:$0 sm:$0xff] }
  0x51   : > { %v3997_v46 = vpack.c.bf16 %v978_v41, %v966_v40 }
  0x52   : > { %525 = vperm.xlu0 %3510, %v350_v50  }
  0x53   : > { %416 = vperm.xlu1 %3513, %v350_v50   ;;  %v3999_v50 = vpack.c.bf16 %v984_v45, %v972_v42 }
  0x56   : > { %529 = vperm.xlu0 %3510, %v351_v53  }
  0x57   : > { %421 = vperm.xlu1 %3513, %v351_v53  }
  0x5a   : > { %533 = vperm.xlu0 %3510, %v352_v4  }
  0x5b   : > { %426 = vperm.xlu1 %3513, %v352_v4   ;;  %v435_v4 = vshrl.u32 %v434_v55, 7 }
  0x5d   : > { %v4009_v5 = vsub.s32 0, %v435_v4  ;;  %v4017_v13 = vsub.s32 1, %v435_v4 }
  0x5e   : > { %537 = vperm.xlu0 %3510, %v353_v22  }
  0x5f   : > { %431 = vperm.xlu1 %3513, %v353_v22   ;;  %5216 = vst [vmem:[#allocation5_spill] sm:$0xff] %v4009_v5  ;;  %v4015_v12 = vrot.slane %v280_v7, %v4009_v5  ;;  %5217 = vst [vmem:[#allocation6_spill] sm:$0xff] %v4017_v13  ;;  %v4026_v37 = vrot.slane %v280_v7, %v4017_v13 }
  0xa0   : > { %v357_v23 = vpop.permute.xlu0 %356  ;;  %v362_v26 = vpop.permute.xlu1 %361 }
  0xa1   : > { %v438_v27 = vmul.f32 %v4015_v12, %v357_v23  ;;  %v439_v22 = vmul.f32 %v4015_v12, %v362_v26 }
  0xa3   : > { %v460_v40 = vadd.f32 %v4031_v2, %v438_v27  ;;  %v461_v41 = vadd.f32 %v4031_v2, %v439_v22 }
  0xa5   : > { %v482_v38 = vpop.permute.xlu1 %481  ;;  %v478_v39 = vpop.permute.xlu0 %477 }
  0xa6   : > { %v545_v42 = vmul.f32 %v4026_v37, %v482_v38  ;;  %v544_v45 = vmul.f32 %v4026_v37, %v478_v39 }
  0xa8   : > { %v561_v55 = vadd.f32 %v545_v42, %v461_v41  ;;  %v560_v4 = vadd.f32 %v544_v45, %v460_v40 }
  0xa9   : > { %v486_v23 = vpop.permute.xlu0 %485 }
  0xaa   : > { %3514 = vtanh.f32 %v561_v55  ;;  %v367_v7 = vpop.permute.xlu1 %366  ;;  %v546_v36 = vmul.f32 %v4026_v37, %v486_v23 }
  0xab   : > { %3516 = vtanh.f32 %v560_v4  ;;  %v440_v26 = vmul.f32 %v4015_v12, %v367_v7 }
  0xad   : > { %v462_v35 = vadd.f32 %v4031_v2, %v440_v26  ;;  %v490_v34 = vpop.permute.xlu0 %489 }
  0xae   : > { %v372_v27 = vpop.permute.xlu1 %371  ;;  %v547_v38 = vmul.f32 %v4026_v37, %v490_v34 }
  0xaf   : > { %v562_v32 = vadd.f32 %v546_v36, %v462_v35  ;;  %v441_v22 = vmul.f32 %v4015_v12, %v372_v27 }
  0xb1   : > { %3518 = vtanh.f32 %v562_v32  ;;  %v463_v39 = vadd.f32 %v4031_v2, %v441_v22  ;;  %v494_v40 = vpop.permute.xlu0 %493 }
  0xb2   : > { %v377_v41 = vpop.permute.xlu1 %376  ;;  %v548_v23 = vmul.f32 %v4026_v37, %v494_v40 }
  0xb3   : > { %v563_v42 = vadd.f32 %v547_v38, %v463_v39  ;;  %v442_v45 = vmul.f32 %v4015_v12, %v377_v41 }
  0xb4   : > { %v3515_v55 = vpop.eup %3514 }
  0xb5   : > { %v3517_v4 = vpop.eup %3516  ;;  %3520 = vtanh.f32 %v563_v42  ;;  %v464_v35 = vadd.f32 %v4031_v2, %v442_v45  ;;  %v498_v36 = vpop.permute.xlu0 %497  ;;  %v608_v32 = vsel %vm603_vm1, %v3515_v55, 0 }
  0xb6   : > { %v382_v7 = vpop.permute.xlu1 %381  ;;  %v605_v34 = vsel %vm603_vm1, %v3517_v4, 0  ;;  %v4048_v26 = vand.u32 4294901760, %v608_v32  ;;  %v549_v40 = vmul.f32 %v4026_v37, %v498_v36 }
  0xb7   : > { %v564_v27 = vadd.f32 %v548_v23, %v464_v35  ;;  %v443_v22 = vmul.f32 %v4015_v12, %v382_v7  ;;  %v4051_v38 = vand.u32 4294901760, %v605_v34  ;;  %v4064_v23 = vsub.f32 %v3887_v6, %v3904_v14 }
  0xb8   : > { %v4054_v39 = vsub.f32 %v608_v32, %v4048_v26 }
  0xb9   : > { %3522 = vtanh.f32 %v564_v27  ;;  %v465_v41 = vadd.f32 %v4031_v2, %v443_v22  ;;  %v502_v42 = vpop.permute.xlu0 %501  ;;  %v4059_v45 = vsub.f32 %v605_v34, %v4051_v38 }
  0xba   : > { %v387_v55 = vpop.permute.xlu1 %386  ;;  %v5129_v4 = vand.u32 4294901760, %v4054_v39  ;;  %v550_v36 = vmul.f32 %v4026_v37, %v502_v42 }
  0xbb   : > { %v3519_v35 = vpop.eup %3518  ;;  %v565_v7 = vadd.f32 %v549_v40, %v465_v41  ;;  %v444_v32 = vmul.f32 %v4015_v12, %v387_v55  ;;  %v5125_v27 = vand.u32 4294901760, %v4059_v45  ;;  %v4078_v40 = vsub.f32 %v3906_v15, %v3910_v17 }
  0xbc   : > { %v611_v22 = vsel %vm603_vm1, %v3519_v35, 0  ;;  %v752_v42 = vsub.f32 %v4054_v39, %v5129_v4  ;;  %v5131_v55 = vand.u32 4294901760, %v4064_v23 }
  0xbd   : > { %3524 = vtanh.f32 %v565_v7  ;;  %v466_v34 = vadd.f32 %v4031_v2, %v444_v32  ;;  %v506_v63 = vpop.permute.xlu0 %505  ;;  %v741_v62 = vsub.f32 %v4059_v45, %v5125_v27  ;;  %v4074_v6 = vand.u32 4294901760, %v611_v22 }
  0xbe   : > { %v392_v41 = vpop.permute.xlu1 %391  ;;  %v551_v56 = vmul.f32 %v4026_v37, %v506_v63  ;;  %v989_v63 = vsub.f32 %v4064_v23, %v5131_v55 }
  0xbf   : > { %v3521_v35 = vpop.eup %3520  ;;  %v566_v7 = vadd.f32 %v550_v36, %v466_v34  ;;  %v445_v32 = vmul.f32 %v4015_v12, %v392_v41  ;;  %v742_v57 = vand.u32 4294901760, %v741_v62  ;;  %v4086_v27 = vsub.f32 %v611_v22, %v4074_v6 }
  0xc0   : > { %v614_v15 = vsel %vm603_vm1, %v3521_v35, 0  ;;  %v753_v62 = vand.u32 4294901760, %v752_v42  ;;  %v5133_v22 = vand.u32 4294901760, %v4078_v40 }
  0xc1   : > { %3526 = vtanh.f32 %v566_v7  ;;  %v467_v29 = vadd.f32 %v4031_v2, %v445_v32  ;;  %743 = vmatmul.mubr.f32.vlgmr.msra.gmra.mrb[0].mxu0 %v742_v57  ;;  %v510_v24 = vpop.permute.xlu0 %509  ;;  %v5132_v4 = vand.u32 4294901760, %v4086_v27  ;;  %v4092_v21 = vand.u32 4294901760, %v614_v15 }
  0xc2   : > { %3016 = vmatpush1.bf16.msra.mxu0 %v3950_v49  ;;  %v397_v36 = vpop.permute.xlu1 %396  ;;  %748 = vmatprep.mubr.f32.mxu0 %v5143_v18  ;;  %v552_v42 = vmul.f32 %v4026_v37, %v510_v24  ;;  %v995_v24 = vsub.f32 %v4078_v40, %v5133_v22 }
  0xc3   : > { %v3523_v34 = vpop.eup %3522  ;;  %v567_v41 = vadd.f32 %v551_v56, %v467_v29  ;;  %v446_v57 = vmul.f32 %v4015_v12, %v397_v36  ;;  %v763_v35 = vsub.f32 %v4086_v27, %v5132_v4  ;;  %v4105_v49 = vsub.f32 %v614_v15, %v4092_v21  ;;  %3018 = vmatprep.subr.bf16.mxu0 %v3977_v25 }
  0xc4   : > { %v617_v7 = vsel %vm603_vm1, %v3523_v34, 0 }
  0xc5   : > { %3528 = vtanh.f32 %v567_v41  ;;  %v468_v32 = vadd.f32 %v4031_v2, %v446_v57  ;;  %754 = vmatmul.mubr.f32.gmra.mrb[2].mxu0 %v753_v62  ;;  %v514_v29 = vpop.permute.xlu0 %513  ;;  %v764_v56 = vand.u32 4294901760, %v763_v35  ;;  %v5137_v36 = vand.u32 4294901760, %v4105_v49 }
  0xc6   : > { %v402_v55 = vpop.permute.xlu1 %401  ;;  %759 = vmatprep.mubr.f32.mxu0 %v5143_v18  ;;  %v4113_v4 = vand.u32 4294901760, %v617_v7  ;;  %3020 = vmatpush1.bf16.msra.mxu0 %v3979_v31  ;;  %v990_v41 = vand.u32 4294901760, %v989_v63  ;;  %v553_v57 = vmul.f32 %v4026_v37, %v514_v29  ;;  %v996_v63 = vand.u32 4294901760, %v995_v24 }
  0xc7   : > { %v3525_v25 = vpop.eup %3524  ;;  %v568_v15 = vadd.f32 %v552_v42, %v468_v32  ;;  %v447_v34 = vmul.f32 %v4015_v12, %v402_v55  ;;  %v774_v62 = vsub.f32 %v4105_v49, %v5137_v36  ;;  %3022 = vmatprep.subr.bf16.mxu0 %v3997_v46 }
  0xc8   : > { %v4126_v35 = vsub.f32 %v617_v7, %v4113_v4  ;;  %v620_v31 = vsel %vm603_vm1, %v3525_v25, 0 }
  0xc9   : > { %3530 = vtanh.f32 %v568_v15  ;;  %v469_v22 = vadd.f32 %v4031_v2, %v447_v34  ;;  %765 = vmatmul.mubr.f32.gmra.mrb[4].mxu0 %v764_v56  ;;  %v518_v42 = vpop.permute.xlu0 %517  ;;  %v775_v55 = vand.u32 4294901760, %v774_v62  ;;  %v4130_v32 = vand.u32 4294901760, %v620_v31 }
  0xca   : > { %v407_v28 = vpop.permute.xlu1 %406  ;;  %770 = vmatprep.mubr.f32.mxu0 %v5143_v18  ;;  %v5135_v46 = vand.u32 4294901760, %v4126_v35  ;;  %3024 = vmatpush1.bf16.msra.mxu0 %v3999_v50  ;;  %v554_v56 = vmul.f32 %v4026_v37, %v518_v42 }
  0xcb   : > { %v3527_v7 = vpop.eup %3526  ;;  %v569_v29 = vadd.f32 %v553_v57, %v469_v22  ;;  %v448_v25 = vmul.f32 %v4015_v12, %v407_v28  ;;  %v4137_v15 = vsub.f32 %v620_v31, %v4130_v32  ;;  %991 = vmatprep.subr.mxu0 %v990_v41 }
  0xcc   : > { %v785_v34 = vsub.f32 %v4126_v35, %v5135_v46  ;;  %v623_v62 = vsel %vm603_vm1, %v3527_v7, 0 }
  0xcd   : > { %3532 = vtanh.f32 %v569_v29  ;;  %v470_v50 = vadd.f32 %v4031_v2, %v448_v25  ;;  %776 = vmatmul.mubr.f32.gmra.mrb[6].mxu0 %v775_v55  ;;  %v522_v24 = vpop.permute.xlu0 %521  ;;  %v5136_v22 = vand.u32 4294901760, %v4137_v15  ;;  %v4146_v28 = vand.u32 4294901760, %v623_v62 }
  0xce   : > { %v412_v57 = vpop.permute.xlu1 %411  ;;  %781 = vmatprep.mubr.f32.mxu0 %v5143_v18  ;;  %v786_v41 = vand.u32 4294901760, %v785_v34  ;;  %997 = vmatpush1.msra.mxu0 %v996_v63  ;;  %v555_v29 = vmul.f32 %v4026_v37, %v522_v24 }
  0xcf   : > { %v3529_v31 = vpop.eup %3528  ;;  %v570_v42 = vadd.f32 %v554_v56, %v470_v50  ;;  %v449_v46 = vmul.f32 %v4015_v12, %v412_v57  ;;  %v796_v7 = vsub.f32 %v4137_v15, %v5136_v22  ;;  %v4154_v55 = vsub.f32 %v623_v62, %v4146_v28  ;;  %3026 = vmatprep.subr.bf16.mxu0 %v3025_v51 }
  0xd0   : > { %v626_v25 = vsel %vm603_vm1, %v3529_v31, 0 }
  0xd1   : > { %3534 = vtanh.f32 %v570_v42  ;;  %v471_v63 = vadd.f32 %v4031_v2, %v449_v46  ;;  %787 = vmatmul.mubr.f32.gmra.mrb[8].mxu0 %v786_v41  ;;  %v526_v56 = vpop.permute.xlu0 %525  ;;  %v797_v34 = vand.u32 4294901760, %v796_v7  ;;  %v5138_v50 = vand.u32 4294901760, %v4154_v55 }
  0xd2   : > { %v417_v57 = vpop.permute.xlu1 %416  ;;  %792 = vmatprep.mubr.f32.mxu0 %v5143_v18  ;;  %v4164_v62 = vand.u32 4294901760, %v626_v25  ;;  %v556_v46 = vmul.f32 %v4026_v37, %v526_v56 }
  0xd3   : > { %v3531_v22 = vpop.eup %3530  ;;  %v571_v36 = vadd.f32 %v555_v29, %v471_v63  ;;  %v450_v51 = vmul.f32 %v4015_v12, %v417_v57  ;;  %v807_v24 = vsub.f32 %v4154_v55, %v5138_v50 }
  0xd4   : > { %v4172_v41 = vsub.f32 %v626_v25, %v4164_v62  ;;  %v629_v31 = vsel %vm603_vm1, %v3531_v22, 0 }
  0xd5   : > { %3536 = vtanh.f32 %v571_v36  ;;  %v472_v42 = vadd.f32 %v4031_v2, %v450_v51  ;;  %798 = vmatmul.mubr.f32.gmra.mrb[10].mxu0 %v797_v34  ;;  %v530_v7 = vpop.permute.xlu0 %529  ;;  %v808_v1 = vand.u32 4294901760, %v807_v24  ;;  %v4176_v29 = vand.u32 4294901760, %v629_v31 }
  0xd6   : > { %v422_v63 = vpop.permute.xlu1 %421  ;;  %803 = vmatprep.mubr.f32.mxu0 %v5143_v18  ;;  %v5139_v57 = vand.u32 4294901760, %v4172_v41  ;;  %v557_v36 = vmul.f32 %v4026_v37, %v530_v7 }
  0xd7   : > { %v3533_v50 = vpop.eup %3532  ;;  %v572_v56 = vadd.f32 %v556_v46, %v472_v42  ;;  %v451_v25 = vmul.f32 %v4015_v12, %v422_v63  ;;  %v4182_v16 = vsub.f32 %v629_v31, %v4176_v29 }
  0xd8   : > { %v818_v22 = vsub.f32 %v4172_v41, %v5139_v57  ;;  %v632_v34 = vsel %vm603_vm1, %v3533_v50, 0 }
  0xd9   : > { %3538 = vtanh.f32 %v572_v56  ;;  %v473_v51 = vadd.f32 %v4031_v2, %v451_v25  ;;  %809 = vmatmul.mubr.f32.gmra.mrb[12].mxu0 %v808_v1  ;;  %v534_v24 = vpop.permute.xlu0 %533  ;;  %v5140_v46 = vand.u32 4294901760, %v4182_v16  ;;  %v4191_v42 = vand.u32 4294901760, %v632_v34 }
  0xda   : > { %v427_v63 = vpop.permute.xlu1 %426  ;;  %814 = vmatprep.mubr.f32.mxu0 %v5143_v18  ;;  %v819_v31 = vand.u32 4294901760, %v818_v22  ;;  %v558_v1 = vmul.f32 %v4026_v37, %v534_v24 }
  0xdb   : > { %v3535_v7 = vpop.eup %3534  ;;  %v573_v54 = vadd.f32 %v557_v36, %v473_v51  ;;  %v452_v53 = vmul.f32 %v4015_v12, %v427_v63  ;;  %v829_v50 = vsub.f32 %v4182_v16, %v5140_v46  ;;  %v4199_v56 = vsub.f32 %v632_v34, %v4191_v42 }
  0xdc   : > { %v635_v25 = vsel %vm603_vm1, %v3535_v7, 0 }
  0xdd   : > { %3540 = vtanh.f32 %v573_v54  ;;  %v474_v57 = vadd.f32 %v4031_v2, %v452_v53  ;;  %820 = vmatmul.mubr.f32.gmra.mrb[14].mxu0 %v819_v31  ;;  %v538_v22 = vpop.permute.xlu0 %537  ;;  %v830_v52 = vand.u32 4294901760, %v829_v50  ;;  %v5148_v36 = vand.u32 4294901760, %v4199_v56 }
  0xde   : > { %v432_v51 = vpop.permute.xlu1 %431  ;;  %825 = vmatprep.mubr.f32.mxu0 %v5143_v18  ;;  %v4206_v63 = vand.u32 4294901760, %v635_v25  ;;  %v559_v53 = vmul.f32 %v4026_v37, %v538_v22 }
  0xdf   : > { %v3537_v46 = vpop.eup %3536  ;;  %v574_v34 = vadd.f32 %v558_v1, %v474_v57  ;;  %v453_v5 = vmul.f32 %v4015_v12, %v432_v51  ;;  %v840_v54 = vsub.f32 %v4199_v56, %v5148_v36  ;;  %v5218_v57 = vmov 0.0  }
  0xe0   : > { %v4214_v24 = vsub.f32 %v635_v25, %v4206_v63  ;;  %v638_v31 = vsel %vm603_vm1, %v3537_v46, 0 }
  0xe1   : > { %3542 = vtanh.f32 %v574_v34  ;;  %v475_v7 = vadd.f32 %v4031_v2, %v453_v5  ;;  %831 = vmatmul.mubr.f32.gmra.mrb[16].mxu0 %v830_v52  ;;  %v841_v50 = vand.u32 4294901760, %v840_v54  ;;  %v4218_v18 = vand.u32 4294901760, %v638_v31 }
  0xe2   : > { %836 = vmatprep.mubr.f32.mxu0 %v5218_v57  ;;  %v5146_v12 = vand.u32 4294901760, %v4214_v24 }
  0xe3   : > { %v3539_v1 = vpop.eup %3538  ;;  %v575_v51 = vadd.f32 %v559_v53, %v475_v7  ;;  %v4223_v37 = vsub.f32 %v638_v31, %v4218_v18 }
  0xe4   : > { %v851_v46 = vsub.f32 %v4214_v24, %v5146_v12  ;;  %v641_v25 = vsel %vm603_vm1, %v3539_v1, 0 }
  0xe5   : > { %3544 = vtanh.f32 %v575_v51  ;;  %842 = vmatmul.mubr.f32.gmra.mrb[18].mxu0 %v841_v50  ;;  %v5145_v52 = vand.u32 4294901760, %v4223_v37  ;;  %v4230_v5 = vand.u32 4294901760, %v641_v25 }
  0xe6   : > { %847 = vmatprep.mubr.f32.mxu0 %v5218_v57  ;;  %v852_v2 = vand.u32 4294901760, %v851_v46 }
  0xe7   : > { %v3541_v22 = vpop.eup %3540  ;;  %v862_v34 = vsub.f32 %v4223_v37, %v5145_v52  ;;  %v4237_v54 = vsub.f32 %v641_v25, %v4230_v5 }
  0xe8   : > { %v644_v53 = vsel %vm603_vm1, %v3541_v22, 0 }
  0xe9   : > { %853 = vmatmul.mubr.f32.gmra.mrb[20].mxu0 %v852_v2  ;;  %v863_v31 = vand.u32 4294901760, %v862_v34  ;;  %v5147_v7 = vand.u32 4294901760, %v4237_v54  ;;  %v4241_v50 = vand.u32 4294901760, %v644_v53 }
  0xea   : > { %858 = vmatprep.mubr.f32.mxu0 %v5218_v57 }
  0xeb   : > { %v3543_v1 = vpop.eup %3542  ;;  %v873_v51 = vsub.f32 %v4237_v54, %v5147_v7  ;;  %v4248_v46 = vsub.f32 %v644_v53, %v4241_v50 }
  0xec   : > { %v647_v25 = vsel %vm603_vm1, %v3543_v1, 0 }
  0xed   : > { %864 = vmatmul.mubr.f32.gmra.mrb[22].mxu0 %v863_v31  ;;  %v874_v22 = vand.u32 4294901760, %v873_v51  ;;  %v5151_v2 = vand.u32 4294901760, %v4248_v46  ;;  %v4252_v34 = vand.u32 4294901760, %v647_v25 }
  0xee   : > { %869 = vmatprep.mubr.f32.mxu0 %v5218_v57 }
  0xef   : > { %v3545_v52 = vpop.eup %3544  ;;  %v884_v12 = vsub.f32 %v4248_v46, %v5151_v2  ;;  %v4259_v7 = vsub.f32 %v647_v25, %v4252_v34 }
  0xf0   : > { %v650_v53 = vsel %vm603_vm1, %v3545_v52, 0 }
  0xf1   : > { %875 = vmatmul.mubr.f32.gmra.mrb[24].mxu0 %v874_v22  ;;  %v885_v1 = vand.u32 4294901760, %v884_v12  ;;  %v894_v31 = vand.u32 4294901760, %v4259_v7  ;;  %v4263_v51 = vand.u32 4294901760, %v650_v53  ;;  %v5220_v22 = vpack.c.bf16 %v3869_v59, %v3867_v58 }
  0xf2   : > { %880 = vmatprep.mubr.f32.mxu0 %v5218_v57 }
  0xf3   : > { %v895_v36 = vsub.f32 %v4259_v7, %v894_v31  ;;  %v4270_v13 = vsub.f32 %v650_v53, %v4263_v51  ;;  %v5221_v53 = vpack.c.bf16 %v3874_v61, %v3872_v60 }
  0xf5   : > { %886 = vmatmul.mubr.f32.gmra.mrb[26].mxu0 %v885_v1  ;;  %v896_v25 = vand.u32 4294901760, %v895_v36  ;;  %v5152_v2 = vand.u32 4294901760, %v4270_v13  ;;  %v5219_v36 = vpack.c.bf16 %v3845_v44, %v3843_v43  ;;  %v5222_v1 = vpack.c.bf16 %v3894_v9, %v3892_v8 }
  0xf6   : > { %891 = vmatprep.mubr.f32.mxu0 %v5218_v57 }
  0xf7   : > { %v906_v12 = vsub.f32 %v4270_v13, %v5152_v2 }
  0xf9   : > { %897 = vmatmul.mubr.f32.gmra.mrb[28].mxu0 %v896_v25  ;;  %v907_v52 = vand.u32 4294901760, %v906_v12  ;;  %v5223_v25 = vpack.c.bf16 %v3899_v11, %v3897_v10  ;;  %v5224_v12 = vand.u32 4294901760, %v3917_v19  ;;  %v5226_v19 = vand.u32 4294901760, %v3843_v43 }
  0xfa   : > { %902 = vmatprep.mubr.f32.mxu0 %v5218_v57  ;;  %v5233_v43 = vand.u32 4294901760, %v3892_v8  ;;  %v5239_v8 = vand.u32 4294901760, %v4064_v23 }
  0xfd   : > { %908 = vmatmul.mubr.f32.gmra.mrb[30].mxu0 %v907_v52  ;;  %v5225_v52 = vand.u32 4294901760, %v3922_v20  ;;  %v5227_v20 = vand.u32 4294901760, %v3845_v44  ;;  %v5234_v44 = vand.u32 4294901760, %v3894_v9  ;;  %v5240_v9 = vand.u32 4294901760, %v4105_v49 }
  0xfe   : > { %1048 = vmatprep.mubr.f32.mxu0 %v5218_v57 }
 0x101   : > { %1050 = vmatmul.mubr.f32.vlgmr.msra.gmra.mrb[0].mxu0 %v4051_v38 }
 0x102   : > { %3028 = vmatpush1.bf16.msra.mxu0 %v5219_v36  ;;  %1055 = vmatprep.mubr.f32.mxu0 %v5218_v57  ;;  %v3049_v36 = vpack.c.bf16 %v5225_v52, %v5224_v12  ;;  %v5230_v12 = vand.u32 4294901760, %v4059_v45  ;;  %v5231_v52 = vand.u32 4294901760, %v3872_v60 }
 0x103   : > { %3030 = vmatprep.subr.bf16.mxu0 %v5220_v22  ;;  %v3051_v22 = vpack.c.bf16 %v5227_v20, %v5226_v19  ;;  %v5237_v19 = vand.u32 4294901760, %v3899_v11  ;;  %v5242_v11 = vand.u32 4294901760, %v4126_v35 }
 0x105   : > { %1057 = vmatmul.mubr.f32.gmra.mrb[2].mxu0 %v4048_v26 }
 0x106   : > { %1062 = vmatprep.mubr.f32.mxu0 %v5218_v57  ;;  %3032 = vmatpush1.bf16.msra.mxu0 %v5221_v53  ;;  %v5228_v53 = vand.u32 4294901760, %v3867_v58  ;;  %v3057_v58 = vpack.c.bf16 %v5234_v44, %v5233_v43 }
 0x107   : > { %3034 = vmatprep.subr.bf16.mxu0 %v5222_v1  ;;  %v5229_v1 = vand.u32 4294901760, %v3869_v59  ;;  %v5235_v59 = vand.u32 4294901760, %v4054_v39 }
 0x109   : > { %1064 = vmatmul.mubr.f32.gmra.mrb[4].mxu0 %v4074_v6 }
 0x10a   : > { %1069 = vmatprep.mubr.f32.mxu0 %v5218_v57  ;;  %3036 = vmatpush1.bf16.msra.mxu0 %v5223_v25  ;;  %v3053_v25 = vpack.c.bf16 %v5229_v1, %v5228_v53 }
 0x10b   : > { %1199 = vmatprep.subr.mxu0 %v4064_v23  ;;  %v5244_v23 = vand.u32 4294901760, %v4154_v55 }
 0x10d   : > { %1071 = vmatmul.mubr.f32.gmra.mrb[6].mxu0 %v4092_v21 }
 0x10e   : > { %1076 = vmatprep.mubr.f32.mxu0 %v5218_v57  ;;  %1202 = vmatpush1.msra.mxu0 %v4078_v40 }
 0x10f   : > { %3038 = vmatprep.subr.bf16.mxu0 %v3822_v30 }
 0x111   : > { %1078 = vmatmul.mubr.f32.gmra.mrb[8].mxu0 %v4113_v4 }
 0x112   : > { %1083 = vmatprep.mubr.f32.mxu0 %v5218_v57 }
 0x115   : > { %1085 = vmatmul.mubr.f32.gmra.mrb[10].mxu0 %v4130_v32 }
 0x116   : > { %1090 = vmatprep.mubr.f32.mxu0 %v5218_v57 }
 0x119   : > { %1092 = vmatmul.mubr.f32.gmra.mrb[12].mxu0 %v4146_v28 }
 0x11a   : > { %1097 = vmatprep.mubr.f32.mxu0 %v5218_v57 }
 0x11d   : > { %1099 = vmatmul.mubr.f32.gmra.mrb[14].mxu0 %v4164_v62 }
 0x11e   : > { %1104 = vmatprep.mubr.f32.mxu0 %v5218_v57 }
 0x121   : > { %1106 = vmatmul.mubr.f32.gmra.mrb[16].mxu0 %v4176_v29 }
 0x122   : > { %1111 = vmatprep.mubr.f32.mxu0 %v5218_v57 }
 0x125   : > { %1113 = vmatmul.mubr.f32.gmra.mrb[18].mxu0 %v4191_v42 }
 0x126   : > { %1118 = vmatprep.mubr.f32.mxu0 %v5218_v57 }
 0x129   : > { %1120 = vmatmul.mubr.f32.gmra.mrb[20].mxu0 %v4206_v63 }
 0x12a   : > { %1125 = vmatprep.mubr.f32.mxu0 %v5218_v57 }
 0x12d   : > { %1127 = vmatmul.mubr.f32.gmra.mrb[22].mxu0 %v4218_v18 }
 0x12e   : > { %1132 = vmatprep.mubr.f32.mxu0 %v5218_v57 }
 0x131   : > { %1134 = vmatmul.mubr.f32.gmra.mrb[24].mxu0 %v4230_v5 }
 0x132   : > { %1139 = vmatprep.mubr.f32.mxu0 %v5218_v57 }
 0x135   : > { %1141 = vmatmul.mubr.f32.gmra.mrb[26].mxu0 %v4241_v50 }
 0x136   : > { %1146 = vmatprep.mubr.f32.mxu0 %v5218_v57 }
 0x139   : > { %1148 = vmatmul.mubr.f32.gmra.mrb[28].mxu0 %v4252_v34 }
 0x13a   : > { %1153 = vmatprep.mubr.f32.mxu0 %v5218_v57 }
 0x13d   : > { %1155 = vmatmul.mubr.f32.gmra.mrb[30].mxu0 %v4263_v51 }
 0x13e   : > { %1253 = vmatprep.mubr.f32.mxu0 %v5218_v57 }
 0x141   : > { %1256 = vmatmul.mubr.f32.vlgmr.msra.gmra.mrb[0].mxu0 %v4059_v45  ;;  %v5236_v45 = vand.u32 4294901760, %v3897_v10  ;;  %v5241_v10 = vand.u32 4294901760, %v4078_v40  ;;  %v5247_v40 = vand.u32 4294901760, %v4199_v56 }
 0x142   : > { %3040 = vmatpush1.bf16.msra.mxu0 %v3826_v33  ;;  %1261 = vmatprep.mubr.f32.mxu0 %v5218_v57 }
 0x143   : > { %3042 = vmatprep.subr.bf16.mxu0 %v3849_v47  ;;  %v3059_v60 = vpack.c.bf16 %v5237_v19, %v5236_v45 }
 0x145   : > { %1264 = vmatmul.mubr.f32.gmra.mrb[2].mxu0 %v4054_v39  ;;  %v5243_v39 = vand.u32 4294901760, %v4137_v15 }
 0x146   : > { %1269 = vmatprep.mubr.f32.mxu0 %v5218_v57  ;;  %3044 = vmatpush1.bf16.msra.mxu0 %v3851_v48 }
 0x147   : > { %3046 = vmatprep.subr.bf16.mxu0 %v3878_v0 }
 0x149   : > { %1272 = vmatmul.mubr.f32.gmra.mrb[4].mxu0 %v4086_v27 }
 0x14a   : > { %1277 = vmatprep.mubr.f32.mxu0 %v5218_v57  ;;  %3048 = vmatpush1.bf16.msra.mxu0 %v3880_v3 }
 0x14b   : > { %1407 = vmatprep.subr.mxu0 %v3904_v14 }
 0x14d   : > { %1280 = vmatmul.mubr.f32.gmra.mrb[6].mxu0 %v4105_v49  ;;  %v5248_v49 = vand.u32 4294901760, %v4214_v24 }
 0x14e   : > { %1285 = vmatprep.mubr.f32.mxu0 %v5218_v57  ;;  %1409 = vmatpush1.msra.mxu0 %v3910_v17 }
 0x14f   : > { %3050 = vmatprep.subr.bf16.mxu0 %v3049_v36  ;;  %v5232_v36 = vand.u32 4294901760, %v3874_v61  ;;  %v5238_v61 = vand.u32 4294901760, %v4086_v27  ;;  %v5245_v27 = vand.u32 4294901760, %v4172_v41 }
 0x151   : > { %1288 = vmatmul.mubr.f32.gmra.mrb[8].mxu0 %v4126_v35  ;;  %v3055_v2 = vpack.c.bf16 %v5232_v36, %v5231_v52  ;;  %v5249_v35 = vand.u32 4294901760, %v4223_v37 }
 0x152   : > { %1293 = vmatprep.mubr.f32.mxu0 %v5218_v57 }
 0x155   : > { %1296 = vmatmul.mubr.f32.gmra.mrb[10].mxu0 %v4137_v15  ;;  %v5251_v15 = vand.u32 4294901760, %v4248_v46 }
 0x156   : > { %1301 = vmatprep.mubr.f32.mxu0 %v5218_v57 }
 0x159   : > { %1304 = vmatmul.mubr.f32.gmra.mrb[12].mxu0 %v4154_v55  ;;  %v5252_v55 = vand.u32 4294901760, %v4270_v13 }
 0x15a   : > { %1309 = vmatprep.mubr.f32.mxu0 %v5218_v57 }
 0x15d   : > { %1312 = vmatmul.mubr.f32.gmra.mrb[14].mxu0 %v4172_v41 }
 0x15e   : > { %1317 = vmatprep.mubr.f32.mxu0 %v5218_v57 }
 0x161   : > { %1320 = vmatmul.mubr.f32.gmra.mrb[16].mxu0 %v4182_v16 }
 0x162   : > { %1325 = vmatprep.mubr.f32.mxu0 %v5218_v57 }
 0x165   : > { %1328 = vmatmul.mubr.f32.gmra.mrb[18].mxu0 %v4199_v56 }
 0x166   : > { %1333 = vmatprep.mubr.f32.mxu0 %v5218_v57 }
 0x169   : > { %1336 = vmatmul.mubr.f32.gmra.mrb[20].mxu0 %v4214_v24 }
 0x16a   : > { %1341 = vmatprep.mubr.f32.mxu0 %v5218_v57 }
 0x16d   : > { %1344 = vmatmul.mubr.f32.gmra.mrb[22].mxu0 %v4223_v37 }
 0x16e   : > { %1349 = vmatprep.mubr.f32.mxu0 %v5218_v57 }
 0x171   : > { %1352 = vmatmul.mubr.f32.gmra.mrb[24].mxu0 %v4237_v54 }
 0x172   : > { %1357 = vmatprep.mubr.f32.mxu0 %v5218_v57 }
 0x175   : > { %1360 = vmatmul.mubr.f32.gmra.mrb[26].mxu0 %v4248_v46 }
 0x176   : > { %1365 = vmatprep.mubr.f32.mxu0 %v5218_v57 }
 0x179   : > { %1368 = vmatmul.mubr.f32.gmra.mrb[28].mxu0 %v4259_v7 }
 0x17a   : > { %1373 = vmatprep.mubr.f32.mxu0 %v5218_v57 }
 0x17d   : > { %1376 = vmatmul.mubr.f32.gmra.mrb[30].mxu0 %v4270_v13  ;;  %v5255_v13 = vld [vmem:[#allocation5_spill] sm:$0xff] }
 0x17e   : > { %1460 = vmatprep.mubr.f32.mxu0 %v5218_v57 }
 0x181   : > { %1464 = vmatmul.mubr.f32.vlgmr.msra.gmra.mrb[0].mxu0 %v5230_v12 }
 0x182   : > { %3052 = vmatpush1.bf16.msra.mxu0 %v3051_v22  ;;  %1469 = vmatprep.mubr.f32.mxu0 %v5218_v57 }
 0x183   : > { %3054 = vmatprep.subr.bf16.mxu0 %v3053_v25 }
 0x185   : > { %1473 = vmatmul.mubr.f32.gmra.mrb[2].mxu0 %v5235_v59 }
 0x186   : > { %1478 = vmatprep.mubr.f32.mxu0 %v5218_v57  ;;  %3056 = vmatpush1.bf16.msra.mxu0 %v3055_v2 }
 0x187   : > { %3058 = vmatprep.subr.bf16.mxu0 %v3057_v58 }
 0x189   : > { %1482 = vmatmul.mubr.f32.gmra.mrb[4].mxu0 %v5238_v61 }
 0x18a   : > { %1487 = vmatprep.mubr.f32.mxu0 %v5218_v57  ;;  %3060 = vmatpush1.bf16.msra.mxu0 %v3059_v60 }
 0x18b   : > { %1656 = vmatprep.subr.mxu0 %v5239_v8 }
 0x18d   : > { %1491 = vmatmul.mubr.f32.gmra.mrb[6].mxu0 %v5240_v9 }
 0x18e   : > { %1496 = vmatprep.mubr.f32.mxu0 %v5218_v57  ;;  %1660 = vmatpush1.msra.mxu0 %v5241_v10 }
 0x18f   : > { %3062 = vmatprep.subr.bf16.mxu0 %v3822_v30  ;;  %v5246_v30 = vand.u32 4294901760, %v4182_v16  ;;  %v5250_v16 = vand.u32 4294901760, %v4237_v54 }
 0x191   : > { %1500 = vmatmul.mubr.f32.gmra.mrb[8].mxu0 %v5242_v11 }
 0x192   : > { %1505 = vmatprep.mubr.f32.mxu0 %v5218_v57 }
 0x195   : > { %1509 = vmatmul.mubr.f32.gmra.mrb[10].mxu0 %v5243_v39 }
 0x196   : > { %1514 = vmatprep.mubr.f32.mxu0 %v5218_v57 }
 0x199   : > { %1518 = vmatmul.mubr.f32.gmra.mrb[12].mxu0 %v5244_v23 }
 0x19a   : > { %1523 = vmatprep.mubr.f32.mxu0 %v5218_v57 }
 0x19d   : > { %1527 = vmatmul.mubr.f32.gmra.mrb[14].mxu0 %v5245_v27 }
 0x19e   : > { %1532 = vmatprep.mubr.f32.mxu0 %v5218_v57 }
 0x1a1   : > { %1536 = vmatmul.mubr.f32.gmra.mrb[16].mxu0 %v5246_v30 }
 0x1a2   : > { %1541 = vmatprep.mubr.f32.mxu0 %v5218_v57 }
 0x1a5   : > { %1545 = vmatmul.mubr.f32.gmra.mrb[18].mxu0 %v5247_v40 }
 0x1a6   : > { %1550 = vmatprep.mubr.f32.mxu0 %v5218_v57 }
 0x1a9   : > { %1554 = vmatmul.mubr.f32.gmra.mrb[20].mxu0 %v5248_v49 }
 0x1aa   : > { %1559 = vmatprep.mubr.f32.mxu0 %v5218_v57 }
 0x1ad   : > { %1563 = vmatmul.mubr.f32.gmra.mrb[22].mxu0 %v5249_v35 }
 0x1ae   : > { %1568 = vmatprep.mubr.f32.mxu0 %v5218_v57 }
 0x1b1   : > { %1572 = vmatmul.mubr.f32.gmra.mrb[24].mxu0 %v5250_v16 }
 0x1b2   : > { %1577 = vmatprep.mubr.f32.mxu0 %v5218_v57 }
 0x1b5   : > { %1581 = vmatmul.mubr.f32.gmra.mrb[26].mxu0 %v5251_v15 }
 0x1b6   : > { %1586 = vmatprep.mubr.f32.mxu0 %v5218_v57 }
 0x1b9   : > { %1590 = vmatmul.mubr.f32.gmra.mrb[28].mxu0 %v894_v31 }
 0x1ba   : > { %1595 = vmatprep.mubr.f32.mxu0 %v5218_v57 }
 0x1bd   : > { %1599 = vmatmul.mubr.f32.gmra.mrb[30].mxu0 %v5252_v55 }
 0x1be   : > { %1711 = vmatprep.mubr.f32.mxu0 %v5218_v57 }
 0x1c1   : > { %1713 = vmatmul.mubr.f32.vlgmr.msra.gmra.mrb[0].mxu0 %v4051_v38 }
 0x1c2   : > { %3064 = vmatpush1.bf16.msra.mxu0 %v3826_v33  ;;  %1718 = vmatprep.mubr.f32.mxu0 %v5218_v57  ;;  %v297_v33 = vld [vmem:[%s5116_s6] sm:$0x3] }
 0x1c3   : > { %3066 = vmatprep.subr.bf16.mxu0 %v3849_v47  ;;  %v5253_v47 = vld [vmem:[#allocation6_spill] sm:$0xff] }
 0x1c5   : > { %1720 = vmatmul.mubr.f32.gmra.mrb[2].mxu0 %v4048_v26 }
 0x1c6   : > { %1725 = vmatprep.mubr.f32.mxu0 %v5218_v57  ;;  %3068 = vmatpush1.bf16.msra.mxu0 %v3851_v48  ;;  %v2055_v48 = vrot.slane %v297_v33, %v5253_v47 }
 0x1c7   : > { %3070 = vmatprep.subr.bf16.mxu0 %v3878_v0 }
 0x1c8   : > { %v4519_v0 = vand.u32 4294901760, %v2055_v48 }
 0x1c9   : > { %1727 = vmatmul.mubr.f32.gmra.mrb[4].mxu0 %v4074_v6 }
 0x1ca   : > { %1732 = vmatprep.mubr.f32.mxu0 %v5218_v57  ;;  %3072 = vmatpush1.bf16.msra.mxu0 %v3880_v3  ;;  %v4522_v3 = vsub.f32 %v2055_v48, %v4519_v0 }
 0x1cb   : > { %1849 = vmatprep.subr.mxu0 %v3904_v14 }
 0x1cc   : > { %5254 = vst [vmem:[#allocation6_spill] sm:$0xff] %v4522_v3  ;;  %v5154_v14 = vand.u32 4294901760, %v4522_v3 }
 0x1cd   : > { %1734 = vmatmul.mubr.f32.gmra.mrb[6].mxu0 %v4092_v21 }
 0x1ce   : > { %1739 = vmatprep.mubr.f32.mxu0 %v5218_v57  ;;  %1851 = vmatpush1.msra.mxu0 %v3910_v17  ;;  %v2157_v17 = vsub.f32 %v4522_v3, %v5154_v14 }
 0x1d1   : > { %1741 = vmatmul.mubr.f32.gmra.mrb[8].mxu0 %v4113_v4 }
 0x1d2   : > { %1746 = vmatprep.mubr.f32.mxu0 %v5218_v57 }
 0x1d5   : > { %1748 = vmatmul.mubr.f32.gmra.mrb[10].mxu0 %v4130_v32 }
 0x1d6   : > { %1753 = vmatprep.mubr.f32.mxu0 %v5218_v57 }
 0x1d9   : > { %1755 = vmatmul.mubr.f32.gmra.mrb[12].mxu0 %v4146_v28 }
 0x1da   : > { %1760 = vmatprep.mubr.f32.mxu0 %v5218_v57 }
 0x1dd   : > { %1762 = vmatmul.mubr.f32.gmra.mrb[14].mxu0 %v4164_v62 }
 0x1de   : > { %1767 = vmatprep.mubr.f32.mxu0 %v5218_v57 }
 0x1e1   : > { %1769 = vmatmul.mubr.f32.gmra.mrb[16].mxu0 %v4176_v29 }
 0x1e2   : > { %1774 = vmatprep.mubr.f32.mxu0 %v5218_v57 }
 0x1e5   : > { %1776 = vmatmul.mubr.f32.gmra.mrb[18].mxu0 %v4191_v42 }
 0x1e6   : > { %1781 = vmatprep.mubr.f32.mxu0 %v5218_v57 }
 0x1e9   : > { %1783 = vmatmul.mubr.f32.gmra.mrb[20].mxu0 %v4206_v63 }
 0x1ea   : > { %1788 = vmatprep.mubr.f32.mxu0 %v5218_v57 }
 0x1ed   : > { %1790 = vmatmul.mubr.f32.gmra.mrb[22].mxu0 %v4218_v18 }
 0x1ee   : > { %1795 = vmatprep.mubr.f32.mxu0 %v5218_v57 }
 0x1f1   : > { %1797 = vmatmul.mubr.f32.gmra.mrb[24].mxu0 %v4230_v5 }
 0x1f2   : > { %1802 = vmatprep.mubr.f32.mxu0 %v5218_v57 }
 0x1f5   : > { %1804 = vmatmul.mubr.f32.gmra.mrb[26].mxu0 %v4241_v50 }
 0x1f6   : > { %1809 = vmatprep.mubr.f32.mxu0 %v5218_v57 }
 0x1f9   : > { %1811 = vmatmul.mubr.f32.gmra.mrb[28].mxu0 %v4252_v34 }
 0x1fa   : > { %1816 = vmatprep.mubr.f32.mxu0 %v5218_v57 }
 0x1fd   : > { %1818 = vmatmul.mubr.f32.gmra.mrb[30].mxu0 %v4263_v51 }
 0x1fe   : > { %1902 = vmatprep.mubr.f32.mxu0 %v5218_v57 }
 0x201   : > { %1904 = vmatmul.mubr.f32.vlgmr.msra.gmra.mrb[0].mxu0 %v4051_v38 }
 0x202   : > { %1909 = vmatprep.mubr.f32.mxu0 %v5218_v57 }
 0x205   : > { %1911 = vmatmul.mubr.f32.gmra.mrb[2].mxu0 %v4048_v26 }
 0x206   : > { %1916 = vmatprep.mubr.f32.mxu0 %v5218_v57 }
 0x209   : > { %1918 = vmatmul.mubr.f32.gmra.mrb[4].mxu0 %v4074_v6 }
 0x20a   : > { %1923 = vmatprep.mubr.f32.mxu0 %v5218_v57 }
 0x20d   : > { %1925 = vmatmul.mubr.f32.gmra.mrb[6].mxu0 %v4092_v21  ;;  %v296_v21 = vld [vmem:[%s5115_s5] sm:$0x3] }
 0x20e   : > { %1930 = vmatprep.mubr.f32.mxu0 %v5218_v57  ;;  %v4532_v26 = vrot.slane %v296_v21, %v5255_v13  ;;  %v4535_v38 = vrot.slane %v296_v21, %v5253_v47 }
 0x211   : > { %1932 = vmatmul.mubr.f32.gmra.mrb[8].mxu0 %v4113_v4  ;;  %v2051_v4 = vrot.slane %v297_v33, %v5255_v13 }
 0x212   : > { %1937 = vmatprep.mubr.f32.mxu0 %v5218_v57 }
 0x213   : > { %v4540_v41 = vand.u32 4294901760, %v2051_v4 }
 0x215   : > { %1939 = vmatmul.mubr.f32.gmra.mrb[10].mxu0 %v4130_v32  ;;  %5256 = vst [vmem:[#allocation5_spill] sm:$0xff] %v4540_v41  ;;  %v4545_v24 = vsub.f32 %v2051_v4, %v4540_v41 }
 0x216   : > { %1944 = vmatprep.mubr.f32.mxu0 %v5218_v57 }
 0x217   : > { %5257 = vst [vmem:[#allocation7_spill] sm:$0xff] %v4545_v24  ;;  %v5153_v7 = vand.u32 4294901760, %v4545_v24 }
 0x219   : > { %1946 = vmatmul.mubr.f32.gmra.mrb[12].mxu0 %v4146_v28  ;;  %v4555_v53 = vsub.f32 %v4545_v24, %v5153_v7 }
 0x21a   : > { %1951 = vmatprep.mubr.f32.mxu0 %v5218_v57 }
 0x21d   : > { %1953 = vmatmul.mubr.f32.gmra.mrb[14].mxu0 %v4164_v62 }
 0x21e   : > { %1958 = vmatprep.mubr.f32.mxu0 %v5218_v57 }
 0x221   : > { %1960 = vmatmul.mubr.f32.gmra.mrb[16].mxu0 %v4176_v29 }
 0x222   : > { %1965 = vmatprep.mubr.f32.mxu0 %v5218_v57 }
 0x225   : > { %1967 = vmatmul.mubr.f32.gmra.mrb[18].mxu0 %v4191_v42 }
 0x226   : > { %1972 = vmatprep.mubr.f32.mxu0 %v5218_v57 }
 0x229   : > { %1974 = vmatmul.mubr.f32.gmra.mrb[20].mxu0 %v4206_v63 }
 0x22a   : > { %1979 = vmatprep.mubr.f32.mxu0 %v5218_v57 }
 0x22d   : > { %1981 = vmatmul.mubr.f32.gmra.mrb[22].mxu0 %v4218_v18  ;;  %v2158_v18 = vand.u32 4294901760, %v2157_v17 }
 0x22e   : > { %1986 = vmatprep.mubr.f32.mxu0 %v5218_v57 }
 0x22f   : > { %2159 = vmatprep.mubr.f32.mxu1 %v2158_v18 }
 0x231   : > { %1988 = vmatmul.mubr.f32.gmra.mrb[24].mxu0 %v4230_v5 }
 0x232   : > { %1993 = vmatprep.mubr.f32.mxu0 %v5218_v57 }
 0x235   : > { %1995 = vmatmul.mubr.f32.gmra.mrb[26].mxu0 %v4241_v50 }
 0x236   : > { %2000 = vmatprep.mubr.f32.mxu0 %v5218_v57 }
 0x239   : > { %2002 = vmatmul.mubr.f32.gmra.mrb[28].mxu0 %v4252_v34 }
 0x23a   : > { %2007 = vmatprep.mubr.f32.mxu0 %v5218_v57 }
 0x23d   : > { %2009 = vmatmul.mubr.f32.gmra.mrb[30].mxu0 %v4263_v51 }
 0x2d4   : > { %v1905_v6 = vpop.f32.mrb[0].mxu0 }
 0x2d5   : > { %v3265_v32 = vadd.f32 %v1905_v6, %v4532_v26  ;;  %v1907_v28 = vpop.f32.mrb[1].mxu0 }
 0x2d6   : > { %v3266_v62 = vadd.f32 %v1907_v28, %v4535_v38 }
 0x2d7   : > { %3546 = vtanh.f32 %v3265_v32 }
 0x2d8   : > { %3548 = vtanh.f32 %v3266_v62  ;;  %v1912_v29 = vpop.f32.mrb[2].mxu0 }
 0x2d9   : > { %v3267_v42 = vadd.f32 %v1912_v29, %v4532_v26  ;;  %v1914_v56 = vpop.f32.mrb[3].mxu0 }
 0x2da   : > { %v3268_v63 = vadd.f32 %v1914_v56, %v4535_v38 }
 0x2db   : > { %3550 = vtanh.f32 %v3267_v42 }
 0x2dc   : > { %3552 = vtanh.f32 %v3268_v63  ;;  %v1919_v57 = vpop.f32.mrb[4].mxu0 }
 0x2dd   : > { %v3269_v37 = vadd.f32 %v1919_v57, %v4532_v26  ;;  %v1921_v5 = vpop.f32.mrb[5].mxu0 }
 0x2de   : > { %v3270_v54 = vadd.f32 %v1921_v5, %v4535_v38 }
 0x2df   : > { %3554 = vtanh.f32 %v3269_v37 }
 0x2e0   : > { %3556 = vtanh.f32 %v3270_v54  ;;  %v1926_v50 = vpop.f32.mrb[6].mxu0 }
 0x2e1   : > { %v3547_v46 = vpop.eup %3546  ;;  %v3271_v2 = vadd.f32 %v1926_v50, %v4532_v26  ;;  %v1928_v34 = vpop.f32.mrb[7].mxu0 }
 0x2e2   : > { %v3549_v31 = vpop.eup %3548  ;;  %v3272_v51 = vadd.f32 %v1928_v34, %v4535_v38  ;;  %v2060_v20 = vand.u32 4294901760, %v3547_v46 }
 0x2e3   : > { %3558 = vtanh.f32 %v3271_v2  ;;  %v2058_v22 = vand.u32 4294901760, %v3549_v31 }
 0x2e4   : > { %3560 = vtanh.f32 %v3272_v51  ;;  %v1933_v1 = vpop.f32.mrb[8].mxu0  ;;  %v4557_v25 = vsub.f32 %v3547_v46, %v2060_v20 }
 0x2e5   : > { %v3551_v12 = vpop.eup %3550  ;;  %v3273_v52 = vadd.f32 %v1933_v1, %v4532_v26  ;;  %v1935_v36 = vpop.f32.mrb[9].mxu0  ;;  %v4560_v43 = vsub.f32 %v3549_v31, %v2058_v22 }
 0x2e6   : > { %v3553_v44 = vpop.eup %3552  ;;  %v3274_v58 = vadd.f32 %v1935_v36, %v4535_v38  ;;  %v2064_v59 = vand.u32 4294901760, %v3551_v12  ;;  %v5167_v45 = vand.u32 4294901760, %v4557_v25 }
 0x2e7   : > { %3562 = vtanh.f32 %v3273_v52  ;;  %v2062_v19 = vand.u32 4294901760, %v3553_v44  ;;  %v5170_v60 = vand.u32 4294901760, %v4560_v43 }
 0x2e8   : > { %3564 = vtanh.f32 %v3274_v58  ;;  %v1940_v8 = vpop.f32.mrb[10].mxu0  ;;  %v4566_v9 = vpack.c.bf16 %v2064_v59, %v2060_v20  ;;  %v4568_v10 = vsub.f32 %v3551_v12, %v2064_v59  ;;  %v2179_v11 = vsub.f32 %v4557_v25, %v5167_v45 }
 0x2e9   : > { %v3555_v39 = vpop.eup %3554  ;;  %v3275_v23 = vadd.f32 %v1940_v8, %v4532_v26  ;;  %v1942_v27 = vpop.f32.mrb[11].mxu0  ;;  %v4574_v30 = vpack.c.bf16 %v2062_v19, %v2058_v22  ;;  %v4576_v40 = vsub.f32 %v3553_v44, %v2062_v19  ;;  %v2173_v49 = vsub.f32 %v4560_v43, %v5170_v60 }
 0x2ea   : > { %5258 = vst [vmem:[#allocation8_spill] sm:$0xff] %v4566_v9  ;;  %v3557_v35 = vpop.eup %3556  ;;  %v3276_v16 = vadd.f32 %v1942_v27, %v4535_v38  ;;  %v2068_v15 = vand.u32 4294901760, %v3555_v39  ;;  %v2180_v55 = vand.u32 4294901760, %v2179_v11  ;;  %v5166_v33 = vand.u32 4294901760, %v4568_v10 }
 0x2eb   : > { %5259 = vst [vmem:[#allocation9_spill] sm:$0xff] %v4574_v30  ;;  %3566 = vtanh.f32 %v3275_v23  ;;  %3074 = vmatprep.subr.bf16.mxu1 %v4574_v30  ;;  %v2066_v47 = vand.u32 4294901760, %v3557_v35  ;;  %v2174_v48 = vand.u32 4294901760, %v2173_v49  ;;  %v5168_v17 = vand.u32 4294901760, %v4576_v40 }
 0x2ec   : > { %3568 = vtanh.f32 %v3276_v16  ;;  %v1947_v18 = vpop.f32.mrb[12].mxu0  ;;  %3076 = vmatpush1.bf16.xpose.msra.mxu1 %v4566_v9  ;;  %v4586_v21 = vsub.f32 %v3555_v39, %v2068_v15  ;;  %v2191_v13 = vsub.f32 %v4568_v10, %v5166_v33 }
 0x2ed   : > { %v3559_v6 = vpop.eup %3558  ;;  %v3277_v32 = vadd.f32 %v1947_v18, %v4532_v26  ;;  %v1949_v28 = vpop.f32.mrb[13].mxu0  ;;  %v4594_v62 = vsub.f32 %v3557_v35, %v2066_v47  ;;  %v2185_v29 = vsub.f32 %v4576_v40, %v5168_v17 }
 0x2ee   : > { %v3561_v56 = vpop.eup %3560  ;;  %v3278_v63 = vadd.f32 %v1949_v28, %v4535_v38  ;;  %v2072_v57 = vand.u32 4294901760, %v3559_v6  ;;  %v2192_v37 = vand.u32 4294901760, %v2191_v13  ;;  %v5162_v5 = vand.u32 4294901760, %v4586_v21 }
 0x2ef   : > { %3570 = vtanh.f32 %v3277_v32  ;;  %v2070_v54 = vand.u32 4294901760, %v3561_v56  ;;  %v2186_v50 = vand.u32 4294901760, %v2185_v29  ;;  %v5164_v46 = vand.u32 4294901760, %v4594_v62 }
 0x2f0   : > { %3572 = vtanh.f32 %v3278_v63  ;;  %v1954_v2 = vpop.f32.mrb[14].mxu0  ;;  %v4604_v34 = vpack.c.bf16 %v2072_v57, %v2068_v15  ;;  %v4606_v31 = vsub.f32 %v3559_v6, %v2072_v57  ;;  %v4608_v51 = vpack.c.bf16 %v2192_v37, %v2180_v55 }
 0x2f1   : > { %v3563_v20 = vpop.eup %3562  ;;  %v3279_v22 = vadd.f32 %v1954_v2, %v4532_v26  ;;  %v1956_v1 = vpop.f32.mrb[15].mxu0  ;;  %v4611_v12 = vpack.c.bf16 %v2070_v54, %v2066_v47  ;;  %v4613_v52 = vsub.f32 %v3561_v56, %v2070_v54  ;;  %v4615_v36 = vpack.c.bf16 %v2186_v50, %v2174_v48 }
 0x2f2   : > { %5260 = vst [vmem:[#allocation10_spill] sm:$0xff] %v4604_v34  ;;  %v3565_v44 = vpop.eup %3564  ;;  %v3280_v58 = vadd.f32 %v1956_v1, %v4535_v38  ;;  %v2076_v59 = vand.u32 4294901760, %v3563_v20  ;;  %v2197_v19 = vsub.f32 %v4594_v62, %v5164_v46  ;;  %v2203_v8 = vsub.f32 %v4586_v21, %v5162_v5 }
 0x2f3   : > { %5261 = vst [vmem:[#allocation11_spill] sm:$0xff] %v4611_v12  ;;  %3574 = vtanh.f32 %v3279_v22  ;;  %3078 = vmatprep.subr.bf16.mxu1 %v4611_v12  ;;  %v2074_v11 = vand.u32 4294901760, %v3565_v44  ;;  %v5163_v39 = vand.u32 4294901760, %v4613_v52  ;;  %v5159_v23 = vand.u32 4294901760, %v4606_v31 }
 0x2f4   : > { %3576 = vtanh.f32 %v3280_v58  ;;  %v1961_v27 = vpop.f32.mrb[16].mxu0  ;;  %3080 = vmatpush1.bf16.xpose.msra.mxu1 %v4604_v34  ;;  %v4628_v49 = vsub.f32 %v3563_v20, %v2076_v59  ;;  %v2198_v35 = vand.u32 4294901760, %v2197_v19  ;;  %v2204_v16 = vand.u32 4294901760, %v2203_v8 }
 0x2f5   : > { %v3567_v15 = vpop.eup %3566  ;;  %v3281_v55 = vadd.f32 %v1961_v27, %v4532_v26  ;;  %v1963_v47 = vpop.f32.mrb[17].mxu0  ;;  %v4631_v48 = vsub.f32 %v3565_v44, %v2074_v11  ;;  %v2209_v18 = vsub.f32 %v4613_v52, %v5163_v39  ;;  %v2215_v13 = vsub.f32 %v4606_v31, %v5159_v23 }
 0x2f6   : > { %v3569_v6 = vpop.eup %3568  ;;  %v3282_v32 = vadd.f32 %v1963_v47, %v4535_v38  ;;  %v2080_v28 = vand.u32 4294901760, %v3567_v15  ;;  %v5155_v29 = vand.u32 4294901760, %v4628_v49 }
 0x2f7   : > { %3578 = vtanh.f32 %v3281_v55  ;;  %v2078_v63 = vand.u32 4294901760, %v3569_v6  ;;  %v2210_v57 = vand.u32 4294901760, %v2209_v18  ;;  %v2216_v37 = vand.u32 4294901760, %v2215_v13 }
 0x2f8   : > { %3580 = vtanh.f32 %v3282_v32  ;;  %v1968_v54 = vpop.f32.mrb[18].mxu0  ;;  %v4643_v50 = vpack.c.bf16 %v2080_v28, %v2076_v59  ;;  %v4645_v2 = vsub.f32 %v3567_v15, %v2080_v28  ;;  %v5158_v20 = vand.u32 4294901760, %v4631_v48 }
 0x2f9   : > { %v3571_v22 = vpop.eup %3570  ;;  %v3283_v1 = vadd.f32 %v1968_v54, %v4532_v26  ;;  %v1970_v44 = vpop.f32.mrb[19].mxu0  ;;  %v4649_v58 = vpack.c.bf16 %v2078_v63, %v2074_v11  ;;  %v4651_v19 = vsub.f32 %v3569_v6, %v2078_v63  ;;  %v4653_v8 = vpack.c.bf16 %v2210_v57, %v2198_v35 }
 0x2fa   : > { %5262 = vst [vmem:[#allocation12_spill] sm:$0xff] %v4643_v50  ;;  %v3573_v27 = vpop.eup %3572  ;;  %v3284_v55 = vadd.f32 %v1970_v44, %v4535_v38  ;;  %v2084_v47 = vand.u32 4294901760, %v3571_v22  ;;  %v4656_v59 = vpack.c.bf16 %v2216_v37, %v2204_v16  ;;  %v2221_v15 = vsub.f32 %v4631_v48, %v5158_v20 }
 0x2fb   : > { %5263 = vst [vmem:[#allocation13_spill] sm:$0xff] %v4649_v58  ;;  %3582 = vtanh.f32 %v3283_v1  ;;  %3082 = vmatprep.subr.bf16.mxu1 %v4649_v58  ;;  %v2082_v18 = vand.u32 4294901760, %v3573_v27  ;;  %v5156_v11 = vand.u32 4294901760, %v4651_v19  ;;  %v2227_v35 = vsub.f32 %v4628_v49, %v5155_v29 }
 0x2fc   : > { %3584 = vtanh.f32 %v3284_v55  ;;  %v1975_v13 = vpop.f32.mrb[20].mxu0  ;;  %3084 = vmatpush1.bf16.xpose.msra.mxu1 %v4643_v50  ;;  %v4667_v16 = vsub.f32 %v3571_v22, %v2084_v47  ;;  %v2222_v6 = vand.u32 4294901760, %v2221_v15  ;;  %v5157_v32 = vand.u32 4294901760, %v4645_v2 }
 0x2fd   : > { %v3575_v28 = vpop.eup %3574  ;;  %v3285_v63 = vadd.f32 %v1975_v13, %v4532_v26  ;;  %v1977_v57 = vpop.f32.mrb[21].mxu0  ;;  %v4671_v37 = vsub.f32 %v3573_v27, %v2082_v18  ;;  %v2233_v54 = vsub.f32 %v4651_v19, %v5156_v11  ;;  %v2228_v1 = vand.u32 4294901760, %v2227_v35 }
 0x2fe   : > { %v3577_v44 = vpop.eup %3576  ;;  %v3286_v55 = vadd.f32 %v1977_v57, %v4535_v38  ;;  %v2088_v7 = vand.u32 4294901760, %v3575_v28  ;;  %v2239_v22 = vsub.f32 %v4645_v2, %v5157_v32  ;;  %v5160_v15 = vand.u32 4294901760, %v4667_v16 }
 0x2ff   : > { %3586 = vtanh.f32 %v3285_v63  ;;  %v2086_v13 = vand.u32 4294901760, %v3577_v44  ;;  %v2234_v14 = vand.u32 4294901760, %v2233_v54  ;;  %v5161_v27 = vand.u32 4294901760, %v4671_v37 }
 0x300   : > { %3588 = vtanh.f32 %v3286_v55  ;;  %v1982_v56 = vpop.f32.mrb[22].mxu0  ;;  %v4682_v42 = vpack.c.bf16 %v2088_v7, %v2084_v47  ;;  %v4684_v35 = vsub.f32 %v3575_v28, %v2088_v7  ;;  %v2240_v4 = vand.u32 4294901760, %v2239_v22 }
 0x301   : > { %v3579_v57 = vpop.eup %3578  ;;  %v3287_v61 = vadd.f32 %v1982_v56, %v4532_v26  ;;  %v1984_v29 = vpop.f32.mrb[23].mxu0  ;;  %v4687_v11 = vpack.c.bf16 %v2086_v13, %v2082_v18  ;;  %v4689_v32 = vsub.f32 %v3577_v44, %v2086_v13  ;;  %v4691_v63 = vpack.c.bf16 %v2234_v14, %v2222_v6 }
 0x302   : > { %5264 = vst [vmem:[#allocation14_spill] sm:$0xff] %v4682_v42  ;;  %v3581_v54 = vpop.eup %3580  ;;  %v3288_v20 = vadd.f32 %v1984_v29, %v4535_v38  ;;  %v2092_v55 = vand.u32 4294901760, %v3579_v57  ;;  %v4694_v23 = vpack.c.bf16 %v2240_v4, %v2228_v1  ;;  %v2245_v7 = vsub.f32 %v4671_v37, %v5161_v27 }
 0x303   : > { %5265 = vst [vmem:[#allocation15_spill] sm:$0xff] %v4687_v11  ;;  %3590 = vtanh.f32 %v3287_v61  ;;  %3086 = vmatprep.subr.bf16.mxu1 %v4687_v11  ;;  %v2090_v56 = vand.u32 4294901760, %v3581_v54  ;;  %v5165_v47 = vand.u32 4294901760, %v4689_v32  ;;  %v2251_v14 = vsub.f32 %v4667_v16, %v5160_v15 }
 0x304   : > { %3592 = vtanh.f32 %v3288_v20  ;;  %v1989_v18 = vpop.f32.mrb[24].mxu0  ;;  %3088 = vmatpush1.bf16.xpose.msra.mxu1 %v4682_v42  ;;  %v4705_v4 = vsub.f32 %v3579_v57, %v2092_v55  ;;  %v2246_v29 = vand.u32 4294901760, %v2245_v7  ;;  %v5169_v6 = vand.u32 4294901760, %v4684_v35 }
 0x305   : > { %v3583_v28 = vpop.eup %3582  ;;  %v3289_v61 = vadd.f32 %v1989_v18, %v4532_v26  ;;  %v1991_v1 = vpop.f32.mrb[25].mxu0  ;;  %v4709_v44 = vsub.f32 %v3581_v54, %v2090_v56  ;;  %v2257_v22 = vsub.f32 %v4689_v32, %v5165_v47  ;;  %v2252_v13 = vand.u32 4294901760, %v2251_v14 }
 0x306   : > { %v3585_v20 = vpop.eup %3584  ;;  %v3290_v15 = vadd.f32 %v1991_v1, %v4535_v38  ;;  %v2096_v27 = vand.u32 4294901760, %v3583_v28  ;;  %v2263_v57 = vsub.f32 %v4684_v35, %v5169_v6 }
 0x307   : > { %3594 = vtanh.f32 %v3289_v61  ;;  %v2094_v18 = vand.u32 4294901760, %v3585_v20  ;;  %v2258_v5 = vand.u32 4294901760, %v2257_v22  ;;  %v5171_v54 = vand.u32 4294901760, %v4709_v44 }
 0x308   : > { %3596 = vtanh.f32 %v3290_v15  ;;  %v1996_v39 = vpop.f32.mrb[26].mxu0  ;;  %v4720_v46 = vpack.c.bf16 %v2096_v27, %v2092_v55  ;;  %v4722_v14 = vsub.f32 %v3583_v28, %v2096_v27  ;;  %v2264_v47 = vand.u32 4294901760, %v2263_v57 }
 0x309   : > { %v3587_v1 = vpop.eup %3586  ;;  %v3291_v33 = vadd.f32 %v1996_v39, %v4532_v26  ;;  %v1998_v45 = vpop.f32.mrb[27].mxu0  ;;  %v4725_v17 = vpack.c.bf16 %v2094_v18, %v2090_v56  ;;  %v4727_v6 = vsub.f32 %v3585_v20, %v2094_v18  ;;  %v4729_v61 = vpack.c.bf16 %v2258_v5, %v2246_v29 }
 0x30a   : > { %5266 = vst [vmem:[#allocation16_spill] sm:$0xff] %v4720_v46  ;;  %v3589_v22 = vpop.eup %3588  ;;  %v3292_v60 = vadd.f32 %v1998_v45, %v4535_v38  ;;  %v2100_v15 = vand.u32 4294901760, %v3587_v1  ;;  %v4732_v7 = vpack.c.bf16 %v2264_v47, %v2252_v13  ;;  %v2269_v27 = vsub.f32 %v4709_v44, %v5171_v54 }
 0x30b   : > { %5267 = vst [vmem:[#allocation17_spill] sm:$0xff] %v4725_v17  ;;  %3598 = vtanh.f32 %v3291_v33  ;;  %3090 = vmatprep.subr.bf16.mxu1 %v4725_v17  ;;  %v2098_v39 = vand.u32 4294901760, %v3589_v22  ;;  %v5180_v55 = vand.u32 4294901760, %v4727_v6  ;;  %v5269_v56 = vand.u32 4294901760, %v4705_v4 }
 0x30c   : > { %5268 = vst [vmem:[#allocation18_spill] sm:$0xff] %v4732_v7  ;;  %3600 = vtanh.f32 %v3292_v60  ;;  %v2003_v29 = vpop.f32.mrb[28].mxu0  ;;  %3092 = vmatpush1.bf16.xpose.msra.mxu1 %v4720_v46  ;;  %v4743_v45 = vsub.f32 %v3587_v1, %v2100_v15  ;;  %v2270_v47 = vand.u32 4294901760, %v2269_v27  ;;  %v5187_v28 = vand.u32 4294901760, %v4722_v14 }
 0x30d   : > { %v2275_v5 = vsub.f32 %v4705_v4, %v5269_v56  ;;  %v3591_v13 = vpop.eup %3590  ;;  %v3293_v33 = vadd.f32 %v2003_v29, %v4532_v26  ;;  %v2005_v20 = vpop.f32.mrb[29].mxu0  ;;  %v4747_v57 = vsub.f32 %v3589_v22, %v2098_v39  ;;  %v2281_v18 = vsub.f32 %v4727_v6, %v5180_v55 }
 0x30e   : > { %v3593_v60 = vpop.eup %3592  ;;  %v3294_v54 = vadd.f32 %v2005_v20, %v4535_v38  ;;  %v2104_v46 = vand.u32 4294901760, %v3591_v13  ;;  %v2287_v1 = vsub.f32 %v4722_v14, %v5187_v28 }
 0x30f   : > { %v2276_v56 = vand.u32 4294901760, %v2275_v5  ;;  %3602 = vtanh.f32 %v3293_v33  ;;  %v2102_v29 = vand.u32 4294901760, %v3593_v60  ;;  %v2282_v17 = vand.u32 4294901760, %v2281_v18 }
 0x310   : > { %3604 = vtanh.f32 %v3294_v54  ;;  %v2010_v42 = vpop.f32.mrb[30].mxu0  ;;  %v4758_v11 = vpack.c.bf16 %v2104_v46, %v2100_v15  ;;  %v4760_v5 = vsub.f32 %v3591_v13, %v2104_v46  ;;  %v2288_v55 = vand.u32 4294901760, %v2287_v1 }
 0x311   : > { %v3595_v20 = vpop.eup %3594  ;;  %v3295_v50 = vadd.f32 %v2010_v42, %v4532_v26  ;;  %v2012_v58 = vpop.f32.mrb[31].mxu0  ;;  %v4763_v34 = vpack.c.bf16 %v2102_v29, %v2098_v39  ;;  %v4765_v28 = vsub.f32 %v3593_v60, %v2102_v29  ;;  %v4767_v33 = vpack.c.bf16 %v2282_v17, %v2270_v47 }
 0x312   : > { %5270 = vst [vmem:[#allocation19_spill] sm:$0xff] %v4758_v11  ;;  %v3597_v18 = vpop.eup %3596  ;;  %v3296_v27 = vadd.f32 %v2012_v58, %v4535_v38  ;;  %v2108_v54 = vand.u32 4294901760, %v3595_v20  ;;  %v4770_v22 = vpack.c.bf16 %v2288_v55, %v2276_v56  ;;  %v5274_v46 = vand.u32 4294901760, %v4747_v57 }
 0x313   : > { %5271 = vst [vmem:[#allocation20_spill] sm:$0xff] %v4763_v34  ;;  %5272 = vst [vmem:[#allocation21_spill] sm:$0xff] %v4767_v33  ;;  %3606 = vtanh.f32 %v3295_v50  ;;  %3094 = vmatprep.subr.bf16.mxu1 %v4763_v34  ;;  %v2106_v26 = vand.u32 4294901760, %v3597_v18  ;;  %v5188_v42 = vand.u32 4294901760, %v4765_v28  ;;  %v5275_v39 = vand.u32 4294901760, %v4743_v45 }
 0x314   : > { %5273 = vst [vmem:[#allocation22_spill] sm:$0xff] %v4770_v22  ;;  %v2293_v15 = vsub.f32 %v4747_v57, %v5274_v46  ;;  %3608 = vtanh.f32 %v3296_v27  ;;  %3096 = vmatpush1.bf16.xpose.msra.mxu1 %v4758_v11  ;;  %v4781_v38 = vsub.f32 %v3595_v20, %v2108_v54  ;;  %v5191_v55 = vand.u32 4294901760, %v4760_v5 }
 0x315   : > { %v2299_v17 = vsub.f32 %v4743_v45, %v5275_v39  ;;  %v3599_v47 = vpop.eup %3598  ;;  %v4784_v13 = vsub.f32 %v3597_v18, %v2106_v26  ;;  %v2305_v50 = vsub.f32 %v4765_v28, %v5188_v42 }
 0x316   : > { %v2294_v58 = vand.u32 4294901760, %v2293_v15  ;;  %v3601_v1 = vpop.eup %3600  ;;  %v2112_v27 = vand.u32 4294901760, %v3599_v47  ;;  %v2311_v29 = vsub.f32 %v4760_v5, %v5191_v55  ;;  %v5198_v20 = vand.u32 4294901760, %v4781_v38 }
 0x317   : > { %v2300_v56 = vand.u32 4294901760, %v2299_v17  ;;  %v2110_v46 = vand.u32 4294901760, %v3601_v1  ;;  %v2306_v15 = vand.u32 4294901760, %v2305_v50  ;;  %v5199_v39 = vand.u32 4294901760, %v4784_v13 }
 0x318   : > { %v4800_v42 = vpack.c.bf16 %v2112_v27, %v2108_v54  ;;  %v4802_v60 = vsub.f32 %v3599_v47, %v2112_v27  ;;  %v2312_v11 = vand.u32 4294901760, %v2311_v29  ;;  %v2323_v55 = vsub.f32 %v4781_v38, %v5198_v20 }
 0x319   : > { %v3603_v34 = vpop.eup %3602  ;;  %v4807_v12 = vpack.c.bf16 %v2110_v46, %v2106_v26  ;;  %v4809_v18 = vsub.f32 %v3601_v1, %v2110_v46  ;;  %v4811_v50 = vpack.c.bf16 %v2306_v15, %v2294_v58  ;;  %v2317_v17 = vsub.f32 %v4784_v13, %v5199_v39 }
 0x31a   : > { %5276 = vst [vmem:[#allocation23_spill] sm:$0xff] %v4800_v42  ;;  %v3605_v54 = vpop.eup %3604  ;;  %v2116_v9 = vand.u32 4294901760, %v3603_v34  ;;  %v4816_v47 = vpack.c.bf16 %v2312_v11, %v2300_v56  ;;  %v2324_v27 = vand.u32 4294901760, %v2323_v55  ;;  %v2334_v29 = vand.u32 4294901760, %v4802_v60 }
 0x31b   : > { %5277 = vst [vmem:[#allocation24_spill] sm:$0xff] %v4807_v12  ;;  %5278 = vst [vmem:[#allocation25_spill] sm:$0xff] %v4811_v50  ;;  %3098 = vmatprep.subr.bf16.mxu1 %v4807_v12  ;;  %v2114_v20 = vand.u32 4294901760, %v3605_v54  ;;  %v2318_v26 = vand.u32 4294901760, %v2317_v17  ;;  %v2328_v1 = vand.u32 4294901760, %v4809_v18  ;;  %v3163_v41 = vpack.c.bf16 %v4802_v60, %v4781_v38 }
 0x31c   : > { %5279 = vst [vmem:[#allocation26_spill] sm:$0xff] %v4816_v47  ;;  %3100 = vmatpush1.bf16.xpose.msra.mxu1 %v4800_v42  ;;  %v4824_v46 = vsub.f32 %v3603_v34, %v2116_v9  ;;  %v2335_v15 = vsub.f32 %v4802_v60, %v2334_v29 }
 0x31d   : > { %v3607_v56 = vpop.eup %3606  ;;  %v4831_v39 = vsub.f32 %v3605_v54, %v2114_v20  ;;  %v2329_v17 = vsub.f32 %v4809_v18, %v2328_v1 }
 0x31e   : > { %v3609_v42 = vpop.eup %3608  ;;  %v2120_v12 = vand.u32 4294901760, %v3607_v56  ;;  %v2336_v24 = vand.u32 4294901760, %v2335_v15  ;;  %v2346_v30 = vand.u32 4294901760, %v4824_v46 }
 0x31f   : > { %v2118_v55 = vand.u32 4294901760, %v3609_v42  ;;  %v2330_v3 = vand.u32 4294901760, %v2329_v17  ;;  %v2340_v54 = vand.u32 4294901760, %v4831_v39 }
 0x320   : > { %v4844_v47 = vpack.c.bf16 %v2120_v12, %v2116_v9  ;;  %v4846_v58 = vsub.f32 %v3607_v56, %v2120_v12  ;;  %v3131_v34 = vpack.c.bf16 %v2336_v24, %v2324_v27  ;;  %v2347_v50 = vsub.f32 %v4824_v46, %v2346_v30 }
 0x321   : > { %v4849_v15 = vpack.c.bf16 %v2118_v55, %v2114_v20  ;;  %v4851_v22 = vsub.f32 %v3609_v42, %v2118_v55  ;;  %v3129_v33 = vpack.c.bf16 %v2330_v3, %v2318_v26  ;;  %v2341_v11 = vsub.f32 %v4831_v39, %v2340_v54 }
 0x322   : > { %5280 = vst [vmem:[#allocation27_spill] sm:$0xff] %v4844_v47  ;;  %v2348_v17 = vand.u32 4294901760, %v2347_v50  ;;  %v2358_v7 = vand.u32 4294901760, %v4846_v58  ;;  %v3167_v9 = vpack.c.bf16 %v4846_v58, %v4824_v46  ;;  %v5281_v3 = vand.u32 4294901760, %v4560_v43 }
 0x323   : > { %3102 = vmatprep.subr.bf16.mxu1 %v4849_v15  ;;  %v2342_v24 = vand.u32 4294901760, %v2341_v11  ;;  %v2352_v12 = vand.u32 4294901760, %v4851_v22  ;;  %v3165_v42 = vpack.c.bf16 %v4851_v22, %v4831_v39  ;;  %v5282_v20 = vand.u32 4294901760, %v4576_v40 }
 0x324   : > { %3104 = vmatpush1.bf16.xpose.msra.mxu1 %v4844_v47  ;;  %v2359_v60 = vsub.f32 %v4846_v58, %v2358_v7  ;;  %v5284_v27 = vand.u32 4294901760, %v4557_v25  ;;  %v5285_v26 = vand.u32 4294901760, %v4568_v10  ;;  %v5287_v11 = vand.u32 4294901760, %v4594_v62 }
 0x325   : > { %v4867_v50 = vpack.c.bf16 %v5282_v20, %v5281_v3  ;;  %v5288_v39 = vand.u32 4294901760, %v4613_v52  ;;  %v5290_v56 = vand.u32 4294901760, %v4586_v21  ;;  %v5291_v3 = vand.u32 4294901760, %v4606_v31  ;;  %3106 = vmatprep.subr.bf16.mxu1 %v4615_v36 }
 0x326   : > { %v4875_v46 = vpack.c.bf16 %v5285_v26, %v5284_v27  ;;  %v2353_v58 = vsub.f32 %v4851_v22, %v2352_v12  ;;  %v5294_v27 = vand.u32 4294901760, %v4651_v19  ;;  %v2360_v36 = vand.u32 4294901760, %v2359_v60 }
 0x327   : > { %5283 = vst [vmem:[#allocation28_spill] sm:$0xff] %v4867_v50  ;;  %v4881_v55 = vpack.c.bf16 %v5288_v39, %v5287_v11  ;;  %v4887_v20 = vpack.c.bf16 %v5291_v3, %v5290_v56  ;;  %v5293_v50 = vand.u32 4294901760, %v4631_v48  ;;  %v5297_v11 = vand.u32 4294901760, %v4645_v2 }
 0x328   : > { %5286 = vst [vmem:[#allocation29_spill] sm:$0xff] %v4875_v46  ;;  %v5296_v46 = vand.u32 4294901760, %v4628_v49  ;;  %v5300_v56 = vand.u32 4294901760, %v4689_v32  ;;  %v5302_v22 = vand.u32 4294901760, %v4667_v16  ;;  %v5311_v60 = vand.u32 4294901760, %v4747_v57 }
 0x329   : > { %5289 = vst [vmem:[#allocation30_spill] sm:$0xff] %v4881_v55  ;;  %5292 = vst [vmem:[#allocation31_spill] sm:$0xff] %v4887_v20  ;;  %v4895_v26 = vpack.c.bf16 %v5294_v27, %v5293_v50  ;;  %v5299_v55 = vand.u32 4294901760, %v4671_v37  ;;  %v5303_v20 = vand.u32 4294901760, %v4684_v35  ;;  %v5305_v50 = vand.u32 4294901760, %v4709_v44 }
 0x32a   : > { %v4901_v39 = vpack.c.bf16 %v5297_v11, %v5296_v46  ;;  %v5306_v27 = vand.u32 4294901760, %v4727_v6  ;;  %v5308_v46 = vand.u32 4294901760, %v4705_v4  ;;  %v5309_v11 = vand.u32 4294901760, %v4722_v14 }
 0x32b   : > { %5295 = vst [vmem:[#allocation32_spill] sm:$0xff] %v4895_v26  ;;  %v4907_v3 = vpack.c.bf16 %v5300_v56, %v5299_v55  ;;  %v4913_v47 = vpack.c.bf16 %v5303_v20, %v5302_v22  ;;  %v2354_v55 = vand.u32 4294901760, %v2353_v58  ;;  %v5312_v56 = vand.u32 4294901760, %v4765_v28 }
 0x32c   : > { %5298 = vst [vmem:[#allocation33_spill] sm:$0xff] %v4901_v39  ;;  %v4919_v26 = vpack.c.bf16 %v5306_v27, %v5305_v50  ;;  %v4925_v39 = vpack.c.bf16 %v5309_v11, %v5308_v46  ;;  %v5313_v20 = vand.u32 4294901760, %v4743_v45  ;;  %v5314_v22 = vand.u32 4294901760, %v4760_v5 }
 0x32d   : > { %5301 = vst [vmem:[#allocation34_spill] sm:$0xff] %v4907_v3  ;;  %5304 = vst [vmem:[#allocation35_spill] sm:$0xff] %v4913_v47  ;;  %v4931_v3 = vpack.c.bf16 %v5312_v56, %v5311_v60  ;;  %v5315_v50 = vand.u32 4294901760, %v4784_v13  ;;  %v5316_v46 = vand.u32 4294901760, %v4781_v38  ;;  %v4947_v11 = vpack.c.bf16 %v2352_v12, %v2340_v54  ;;  %v5321_v38 = vld [vmem:[#allocation25_spill] sm:$0xff] }
 0x32e   : > { %5307 = vst [vmem:[#allocation36_spill] sm:$0xff] %v4919_v26  ;;  %5310 = vst [vmem:[#allocation37_spill] sm:$0xff] %v4925_v39  ;;  %v4937_v47 = vpack.c.bf16 %v5314_v22, %v5313_v20  ;;  %v3135_v26 = vpack.c.bf16 %v2360_v36, %v2348_v17  ;;  %v4949_v39 = vpack.c.bf16 %v2358_v7, %v2346_v30  ;;  %v5317_v56 = vand.u32 4294901760, %v4555_v53  ;;  %v5318_v30 = vld [vmem:[#allocation18_spill] sm:$0xff]  ;;  %v5319_v7 = vld [vmem:[#allocation21_spill] sm:$0xff] }
 0x32f   : > { %v4941_v27 = vpack.c.bf16 %v2328_v1, %v5315_v50  ;;  %v4945_v58 = vpack.c.bf16 %v2334_v29, %v5316_v46  ;;  %v3133_v60 = vpack.c.bf16 %v2354_v55, %v2342_v24  ;;  %v5320_v53 = vld [vmem:[#allocation22_spill] sm:$0xff]  ;;  %v5357_v1 = vld [vmem:[#allocation29_spill] sm:$0xff] }
 0x330   : > { %2165 = vmatmul.mubr.f32.vlgmr.msra.gmra.mrb[0].mxu1 %v5317_v56  ;;  %v5359_v54 = vld [vmem:[#allocation31_spill] sm:$0xff] }
 0x331   : > { %3108 = vmatpush1.bf16.xpose.msra.mxu1 %v4608_v51  ;;  %2395 = vmatprep.mubr.f32.mxu1 %v4519_v0  ;;  %v5322_v51 = vld [vmem:[#allocation26_spill] sm:$0xff] }
 0x332   : > { %3110 = vmatprep.subr.bf16.mxu1 %v4653_v8  ;;  %v5323_v8 = vpack.c.bf16 %v4576_v40, %v4560_v43  ;;  %v5329_v43 = vpack.c.bf16 %v4651_v19, %v4631_v48  ;;  %v5330_v40 = vpack.c.bf16 %v4645_v2, %v4628_v49  ;;  %v5337_v49 = vpack.c.bf16 %v4809_v18, %v4784_v13  ;;  %v5338_v48 = vld [vmem:[#allocation9_spill] sm:$0xff]  ;;  %v5339_v2 = vld [vmem:[#allocation7_spill] sm:$0xff]  ;;  %v5340_v19 = vld [vmem:[#allocation8_spill] sm:$0xff] }
 0x333   : > { %v5354_v13 = vld [vmem:[#allocation27_spill] sm:$0xff]  ;;  %v5355_v18 = vld [vmem:[#allocation28_spill] sm:$0xff]  ;;  %v5356_v29 = vand.u32 4294901760, %v5339_v2 }
 0x334   : > { %v5360_v17 = vld [vmem:[#allocation32_spill] sm:$0xff]  ;;  %v5362_v24 = vld [vmem:[#allocation34_spill] sm:$0xff]  ;;  %v5363_v12 = vld [vmem:[#allocation35_spill] sm:$0xff] }
 0x339   : > { %3112 = vmatpush1.bf16.xpose.msra.mxu1 %v4656_v59  ;;  %v5325_v59 = vpack.c.bf16 %v4568_v10, %v4557_v25  ;;  %v5331_v25 = vpack.c.bf16 %v4689_v32, %v4671_v37  ;;  %v5332_v10 = vpack.c.bf16 %v4684_v35, %v4667_v16  ;;  %v5342_v32 = vld [vmem:[#allocation11_spill] sm:$0xff]  ;;  %v5343_v37 = vld [vmem:[#allocation10_spill] sm:$0xff]  ;;  %v5344_v35 = vld [vmem:[#allocation13_spill] sm:$0xff] }
 0x33a   : > { %3114 = vmatprep.subr.bf16.mxu1 %v4691_v63  ;;  %v5326_v63 = vld [vmem:[#allocation6_spill] sm:$0xff] }
 0x33b   : > { %v5341_v16 = vand.u32 4294901760, %v5326_v63 }
 0x341   : > { %3116 = vmatpush1.bf16.xpose.msra.mxu1 %v4694_v23  ;;  %v5324_v23 = vld [vmem:[#allocation5_spill] sm:$0xff] }
 0x342   : > { %3118 = vmatprep.subr.bf16.mxu1 %v4729_v61  ;;  %v5327_v61 = vpack.c.bf16 %v4613_v52, %v4594_v62  ;;  %v5334_v62 = vpack.c.bf16 %v4722_v14, %v4705_v4  ;;  %v5336_v52 = vpack.c.bf16 %v4760_v5, %v4743_v45  ;;  %v5345_v4 = vld [vmem:[#allocation12_spill] sm:$0xff]  ;;  %v5353_v5 = vld [vmem:[#allocation23_spill] sm:$0xff] }
 0x343   : > { %v5349_v14 = vld [vmem:[#allocation16_spill] sm:$0xff] }
 0x344   : > { %v5350_v45 = vld [vmem:[#allocation20_spill] sm:$0xff] }
 0x349   : > { %3120 = vmatpush1.bf16.xpose.msra.mxu1 %v5318_v30 }
 0x34a   : > { %3122 = vmatprep.subr.bf16.mxu1 %v5319_v7 }
 0x351   : > { %3124 = vmatpush1.bf16.xpose.msra.mxu1 %v5320_v53 }
 0x352   : > { %3126 = vmatprep.subr.bf16.mxu1 %v5321_v38 }
 0x359   : > { %3128 = vmatpush1.bf16.xpose.msra.mxu1 %v5322_v51 }
 0x35a   : > { %3130 = vmatprep.subr.bf16.mxu1 %v3129_v33  ;;  %v5328_v33 = vpack.c.bf16 %v4606_v31, %v4586_v21  ;;  %v5333_v21 = vpack.c.bf16 %v4727_v6, %v4709_v44  ;;  %v5335_v31 = vpack.c.bf16 %v4765_v28, %v4747_v57  ;;  %v5347_v6 = vld [vmem:[#allocation14_spill] sm:$0xff]  ;;  %v5348_v44 = vld [vmem:[#allocation17_spill] sm:$0xff]  ;;  %v5351_v28 = vld [vmem:[#allocation19_spill] sm:$0xff] }
 0x35b   : > { %v5352_v57 = vld [vmem:[#allocation24_spill] sm:$0xff] }
 0x361   : > { %3132 = vmatpush1.bf16.xpose.msra.mxu1 %v3131_v34  ;;  %v5358_v34 = vld [vmem:[#allocation30_spill] sm:$0xff] }
 0x362   : > { %3134 = vmatprep.subr.bf16.mxu1 %v3133_v60 }
 0x369   : > { %3136 = vmatpush1.bf16.xpose.msra.mxu1 %v3135_v26  ;;  %v5365_v26 = vld [vmem:[#allocation37_spill] sm:$0xff] }
 0x36a   : > { %3138 = vmatprep.subr.bf16.mxu1 %v5323_v8 }
 0x370   : > { %2397 = vmatmul.mubr.f32.vlgmr.msra.gmra.mrb[0].mxu1 %v5324_v23 }
 0x371   : > { %3140 = vmatpush1.bf16.xpose.msra.mxu1 %v5325_v59  ;;  %2532 = vmatprep.mubr.f32.mxu1 %v5326_v63 }
 0x372   : > { %3142 = vmatprep.subr.bf16.mxu1 %v5327_v61 }
 0x379   : > { %3144 = vmatpush1.bf16.xpose.msra.mxu1 %v5328_v33 }
 0x37a   : > { %3146 = vmatprep.subr.bf16.mxu1 %v5329_v43 }
 0x381   : > { %3148 = vmatpush1.bf16.xpose.msra.mxu1 %v5330_v40 }
 0x382   : > { %3150 = vmatprep.subr.bf16.mxu1 %v5331_v25 }
 0x389   : > { %3152 = vmatpush1.bf16.xpose.msra.mxu1 %v5332_v10 }
 0x38a   : > { %3154 = vmatprep.subr.bf16.mxu1 %v5333_v21 }
 0x391   : > { %3156 = vmatpush1.bf16.xpose.msra.mxu1 %v5334_v62 }
 0x392   : > { %3158 = vmatprep.subr.bf16.mxu1 %v5335_v31 }
 0x399   : > { %3160 = vmatpush1.bf16.xpose.msra.mxu1 %v5336_v52 }
 0x39a   : > { %3162 = vmatprep.subr.bf16.mxu1 %v5337_v49 }
 0x3a1   : > { %3164 = vmatpush1.bf16.xpose.msra.mxu1 %v3163_v41  ;;  %v5346_v41 = vld [vmem:[#allocation15_spill] sm:$0xff] }
 0x3a2   : > { %3166 = vmatprep.subr.bf16.mxu1 %v3165_v42  ;;  %v5364_v42 = vld [vmem:[#allocation36_spill] sm:$0xff] }
 0x3a9   : > { %3168 = vmatpush1.bf16.xpose.msra.mxu1 %v3167_v9  ;;  %v5361_v9 = vld [vmem:[#allocation33_spill] sm:$0xff] }
 0x3aa   : > { %3170 = vmatprep.subr.bf16.mxu1 %v5338_v48 }
 0x3b0   : > { %2535 = vmatmul.mubr.f32.vlgmr.msra.gmra.mrb[0].mxu1 %v5339_v2 }
 0x3b1   : > { %3172 = vmatpush1.bf16.xpose.msra.mxu1 %v5340_v19  ;;  %2639 = vmatprep.mubr.f32.mxu1 %v5341_v16 }
 0x3b2   : > { %3174 = vmatprep.subr.bf16.mxu1 %v5342_v32 }
 0x3b9   : > { %3176 = vmatpush1.bf16.xpose.msra.mxu1 %v5343_v37 }
 0x3ba   : > { %3178 = vmatprep.subr.bf16.mxu1 %v5344_v35 }
 0x3c1   : > { %3180 = vmatpush1.bf16.xpose.msra.mxu1 %v5345_v4 }
 0x3c2   : > { %3182 = vmatprep.subr.bf16.mxu1 %v5346_v41 }
 0x3c9   : > { %3184 = vmatpush1.bf16.xpose.msra.mxu1 %v5347_v6 }
 0x3ca   : > { %3186 = vmatprep.subr.bf16.mxu1 %v5348_v44 }
 0x3d1   : > { %3188 = vmatpush1.bf16.xpose.msra.mxu1 %v5349_v14 }
 0x3d2   : > { %3190 = vmatprep.subr.bf16.mxu1 %v5350_v45 }
 0x3d9   : > { %3192 = vmatpush1.bf16.xpose.msra.mxu1 %v5351_v28 }
 0x3da   : > { %3194 = vmatprep.subr.bf16.mxu1 %v5352_v57 }
 0x3e1   : > { %3196 = vmatpush1.bf16.xpose.msra.mxu1 %v5353_v5 }
 0x3e2   : > { %3198 = vmatprep.subr.bf16.mxu1 %v4849_v15 }
 0x3e9   : > { %3200 = vmatpush1.bf16.xpose.msra.mxu1 %v5354_v13 }
 0x3ea   : > { %3202 = vmatprep.subr.bf16.mxu1 %v5355_v18 }
 0x3f0   : > { %2643 = vmatmul.mubr.f32.vlgmr.msra.gmra.mrb[0].mxu1 %v5356_v29 }
 0x3f1   : > { %3204 = vmatpush1.bf16.xpose.msra.mxu1 %v5357_v1  ;;  %2809 = vmatprep.mubr.f32.mxu1 %v4519_v0 }
 0x3f2   : > { %3206 = vmatprep.subr.bf16.mxu1 %v5358_v34 }
 0x3f9   : > { %3208 = vmatpush1.bf16.xpose.msra.mxu1 %v5359_v54 }
 0x3fa   : > { %3210 = vmatprep.subr.bf16.mxu1 %v5360_v17 }
 0x401   : > { %3212 = vmatpush1.bf16.xpose.msra.mxu1 %v5361_v9 }
 0x402   : > { %3214 = vmatprep.subr.bf16.mxu1 %v5362_v24 }
 0x409   : > { %3216 = vmatpush1.bf16.xpose.msra.mxu1 %v5363_v12 }
 0x40a   : > { %3218 = vmatprep.subr.bf16.mxu1 %v5364_v42 }
 0x411   : > { %3220 = vmatpush1.bf16.xpose.msra.mxu1 %v5365_v26 }
 0x412   : > { %3222 = vmatprep.subr.bf16.mxu1 %v4931_v3 }
 0x419   : > { %3224 = vmatpush1.bf16.xpose.msra.mxu1 %v4937_v47 }
 0x41a   : > { %3226 = vmatprep.subr.bf16.mxu1 %v4941_v27 }
 0x421   : > { %3228 = vmatpush1.bf16.xpose.msra.mxu1 %v4945_v58 }
 0x422   : > { %3230 = vmatprep.subr.bf16.mxu1 %v4947_v11 }
 0x429   : > { %3232 = vmatpush1.bf16.xpose.msra.mxu1 %v4949_v39 }
 0x42a   : > { %3234 = vmatprep.subr.bf16.mxu1 %v5338_v48 }
 0x430   : > { %2811 = vmatmul.mubr.f32.vlgmr.msra.gmra.mrb[0].mxu1 %v5324_v23 }
 0x431   : > { %3236 = vmatpush1.bf16.xpose.msra.mxu1 %v5340_v19  ;;  %2913 = vmatprep.mubr.f32.mxu1 %v4519_v0 }
 0x432   : > { %3238 = vmatprep.subr.bf16.mxu1 %v5342_v32 }
 0x439   : > { %3240 = vmatpush1.bf16.xpose.msra.mxu1 %v5343_v37 }
 0x43a   : > { %3242 = vmatprep.subr.bf16.mxu1 %v5344_v35 }
 0x441   : > { %3244 = vmatpush1.bf16.xpose.msra.mxu1 %v5345_v4 }
 0x442   : > { %3246 = vmatprep.subr.bf16.mxu1 %v5346_v41 }
 0x449   : > { %3248 = vmatpush1.bf16.xpose.msra.mxu1 %v5347_v6 }
 0x44a   : > { %3250 = vmatprep.subr.bf16.mxu1 %v5348_v44 }
 0x451   : > { %3252 = vmatpush1.bf16.xpose.msra.mxu1 %v5349_v14 }
 0x452   : > { %3254 = vmatprep.subr.bf16.mxu1 %v5350_v45 }
 0x459   : > { %3256 = vmatpush1.bf16.xpose.msra.mxu1 %v5351_v28 }
 0x45a   : > { %3258 = vmatprep.subr.bf16.mxu1 %v5352_v57 }
 0x461   : > { %3260 = vmatpush1.bf16.xpose.msra.mxu1 %v5353_v5 }
 0x462   : > { %3262 = vmatprep.subr.bf16.mxu1 %v4849_v15 }
 0x469   : > { %3264 = vmatpush1.bf16.xpose.msra.mxu1 %v5354_v13 }
 0x470   : > { %2915 = vmatmul.mubr.f32.vlgmr.msra.gmra.mrb[0].mxu1 %v5324_v23 }
 0x543   : > { %v2916_v0 = vpop.f32.mrb[0].mxu1 }
 0x544   : > { %2920 = vst [vmem:[%s271_s19] sm:$0x1] %v2916_v0  ;;  %v2918_v47 = vpop.f32.mrb[1].mxu1 }
 0x545   : > { %3623 = shalt.err (!%p3620_p3)
}
 0x546   : > { %s3624_s13 = scalar_lea.hbm %s5070_s28, 16  ;;  %s3628_s17 = scalar_lea.hbm %s5117_s7, 32 }
 0x547   : > { %p3625_p4 = scmp.ne.s32.totalorder %s5070_s28, %s3624_s13  ;;  %p3629_p9 = scmp.lt.u32.totalorder %s5070_s28, %s5117_s7 }
 0x548   : > { %p3630_p10 = scmp.lt.u32.totalorder %s3628_s17, %s3624_s13  ;;  %p3632_p12 = scmp.lt.u32.totalorder %s3624_s13, %s5070_s28 }
 0x549   : > { %p3626_p7 = pnand %p3625_p4, %p3753_p5 }
 0x54a   : > { %p3631_p11 = por %p3630_p10, %p3629_p9 }
 0x54b   : > { %p3627_p8 = pneg %p3626_p7 }
 0x54c   : > { %p3633_p13 = por %p3632_p12, %p3631_p11 }
 0x54e   : > { %p3634_p0 = pnand %p3633_p13, %p3627_p8 }
 0x550   : > { %3637 = shalt.err (!%p3634_p0)
}
 0x551   : > { %3467 = dma.vmem_to_hbm [thread:$0]  (%p3753_p5), %s5064_s21, 16, %s5070_s28, %s2922_s20  }
 0x552 PF: > { %p3473_p1 = scmp.ge.s32.totalorder %s3672_s27, 2  ;;  %s2946_s22 = sand.u32 1, %s3660_s24  }
 0x553   : > { %s2947_s23 = scalar_lea.sflag [#allocation3], %s2946_s22 }
 0x554   : > { %p3470_p2 = pnand %p3473_p1, %p3757_p6 }
 0x556   : > { %3655 = dma.done.wait (!%p3470_p2), %s2947_s23, 16  }
 0x557   : > { %3657 = vsyncadd (!%p3470_p2), %s2947_s23, 4294967280  ;;  %p17_p3 = scmp.ge.s32.totalorder %s3741_s30, 4   ;;  %s5366_s24 = smov %s3664_s25 }
 0x558   : > { %s5367_s25 = smov %s3668_s26  ;;  %s5368_s26 = smov %s3751_s10 }
 0x559   : > { %s5369_s27 = smov %s3741_s30  ;;  %19 = sbr.rel (!%p17_p3) target bundleno = 3 (0x3), region = 83 }
 0x560   :  { %2951 = vsyncpa [#allocation3], 1 }
 0x561   :  { %2953 = vsyncpa [#allocation3 + $0x1], 1 }

</bundles_post_ra>
